<compile_context>
chip_gen: v7x
topology: tpu7x:2x2x1
jax: 0.10.0
libtpu: 0.0.40
codegen_flags: <defaults>
</compile_context>

<pallas_src>
import functools
import math

import jax
import jax.numpy as jnp
from jax import lax
from jax.experimental import pallas as pl
from jax.experimental.pallas import tpu as pltpu

_LANES = 128
_NEG = -1e30
# dot_general dimension numbers for A @ B^T (contract last dims of both).
_TRANS_B = (((1,), (1,)), ((), ()))


def _relu6(x):
    return jnp.clip(x, 0.0, 6.0)


# ----------------------------------------------------------------------------
# One fused kernel per graph (grid point):
#   fc -> gc1 -> gc2 -> gc3 -> fused heads -> masked softmaxes -> argmaxes
#   -> x[a_start] gather -> in-kernel graph update (aliased outputs)
# ----------------------------------------------------------------------------
def generator_kernel(num_nodes_ref, feat_ref, adj_ref, mask_ref,
                     wfc_ref, bfc_ref,
                     wg1_ref, bg1_ref,
                     wg2_ref, bg2_ref,
                     wg3_ref, bg3_ref,
                     wheads_ref, w2b_ref, hbias_ref,
                     pstart_ref, pend_ref, scal_ref,
                     feat_out_ref, adj_out_ref, mask_out_ref,
                     *, max_nodes):
    f32 = jnp.float32
    mm_dtype = wfc_ref.dtype            # matmul operand dtype (bf16)
    Np = adj_ref.shape[1]
    g = pl.program_id(0)

    feat = feat_ref[0]                  # (Np, nfeat) f32
    adj = adj_ref[0]                    # (Np, Np)    f32
    mask_row = mask_ref[0]              # (1, Np)     f32; 1.0 == mask_start True
    num_nodes = num_nodes_ref[g]        # scalar int32 (SMEM)

    adj_m = adj.astype(mm_dtype)

    # fc: nfeat -> 256, relu6.  F.dropout == identity (eval semantics).
    x = _relu6(jnp.dot(feat.astype(mm_dtype), wfc_ref[...],
                       preferred_element_type=f32) + bfc_ref[...])
    # gcX: out = adj @ (x @ W) + b, relu6
    s = jnp.dot(x.astype(mm_dtype), wg1_ref[...], preferred_element_type=f32)
    x = _relu6(jnp.dot(adj_m, s.astype(mm_dtype), preferred_element_type=f32)
               + bg1_ref[...])
    s = jnp.dot(x.astype(mm_dtype), wg2_ref[...], preferred_element_type=f32)
    x = _relu6(jnp.dot(adj_m, s.astype(mm_dtype), preferred_element_type=f32)
               + bg2_ref[...])
    s = jnp.dot(x.astype(mm_dtype), wg3_ref[...], preferred_element_type=f32)
    x = _relu6(jnp.dot(adj_m, s.astype(mm_dtype), preferred_element_type=f32)
               + bg3_ref[...])                                    # (Np, 32) f32

    # Both collapsed head x-projections in one matmul: (8,32)x(32,Np) -> (8,Np)
    heads = lax.dot_general(wheads_ref[...], x, _TRANS_B,
                            preferred_element_type=f32)
    b1 = hbias_ref[0]
    b2 = hbias_ref[1]

    iota_i = lax.broadcasted_iota(jnp.int32, (1, Np), 1)
    iota_f = iota_i.astype(f32)
    row_iota = lax.broadcasted_iota(jnp.int32, (Np, 1), 0)
    is_lane_pad = iota_i >= max_nodes           # padding beyond maxNumNodes
    is_pad = mask_row > 0.5                     # PyTorch mask_start

    # ---- head 1: masked softmax over nodes, a_start ----
    logits1 = heads[0:1, :] + b1
    logits1 = jnp.where(is_pad, 0.0, logits1)        # masked_fill(mask_start, 0)
    logits1 = jnp.where(is_lane_pad, _NEG, logits1)  # exclude lane padding
    m1 = jnp.max(logits1, axis=1, keepdims=True)
    e1 = jnp.exp(logits1 - m1)
    p_start = e1 * pl.reciprocal(jnp.sum(e1, axis=1, keepdims=True), approx=True)
    pstart_ref[0] = p_start

    # a_start = argmax(p_start.masked_fill(mask_start, -1)), first occurrence
    scored1 = jnp.where(is_lane_pad, -2.0, jnp.where(is_pad, -1.0, p_start))
    max1 = jnp.max(scored1, axis=1, keepdims=True)
    a_start = jnp.min(jnp.where(scored1 == max1, iota_f, float(Np)),
                      axis=1, keepdims=True).astype(jnp.int32)    # (1, 1)

    # x_start = x[a_start] via one-hot matmul (no dynamic slicing)
    is_start = iota_i == a_start                                  # (1, Np)
    x_start = jnp.dot(is_start.astype(f32), x,
                      preferred_element_type=f32)                 # (1, 32)

    # ---- head 2: masked softmax, a_end ----
    xw2b = jnp.sum(x_start * w2b_ref[...], axis=1, keepdims=True)  # (1, 1)
    logits2 = heads[1:2, :] + xw2b + b2
    logits2 = jnp.where(is_start, 0.0, logits2)       # masked_fill(mask_end, 0)
    logits2 = jnp.where(is_lane_pad, _NEG, logits2)
    m2 = jnp.max(logits2, axis=1, keepdims=True)
    e2 = jnp.exp(logits2 - m2)
    p_end = e2 * pl.reciprocal(jnp.sum(e2, axis=1, keepdims=True), approx=True)
    pend_ref[0] = p_end

    scored2 = jnp.where(is_lane_pad, -2.0, jnp.where(is_start, -1.0, p_end))
    max2 = jnp.max(scored2, axis=1, keepdims=True)
    a_end = jnp.min(jnp.where(scored2 == max2, iota_f, float(Np)),
                    axis=1, keepdims=True).astype(jnp.int32)      # (1, 1)

    # ---- in-kernel graph update (outputs aliased with feat/adj/mask inputs) ----
    is_end = iota_i == a_end                                      # (1, Np)
    mask_at_end = jnp.sum(jnp.where(is_end, mask_row, 0.0),
                          axis=1, keepdims=True)                  # (1, 1)
    is_new = mask_at_end > 0.5          # a_end is a not-yet-generated node
    tgt = jnp.where(is_new, num_nodes, a_end)                     # (1, 1) int32

    # adj[tgt, a_start] = adj[a_start, tgt] = 1
    col_is_start = iota_i == a_start                              # (1, Np)
    col_is_tgt = iota_i == tgt                                    # (1, Np)
    row_is_start = row_iota == a_start                            # (Np, 1)
    row_is_tgt = row_iota == tgt                                  # (Np, 1)
    new_edge = (row_is_tgt & col_is_start) | (row_is_start & col_is_tgt)
    adj_out_ref[0] = jnp.where(new_edge, 1.0, adj)

    # feat[num_nodes] = feat[a_end]   (only when a new node is spawned)
    feat_end = jnp.dot(is_end.astype(f32), feat,
                       preferred_element_type=f32)                # (1, nfeat)
    copy_row = jnp.logical_and(is_new, row_iota == num_nodes)     # (Np, 1)
    feat_out_ref[0] = jnp.where(copy_row, feat_end, feat)

    # mask_start[num_nodes] = False   (only when a new node is spawned)
    clear = jnp.logical_and(is_new, iota_i == num_nodes)          # (1, Np)
    mask_out_ref[0] = jnp.where(clear, 0.0, mask_row)

    num_nodes_new = num_nodes + is_new.astype(jnp.int32)          # (1, 1)

    # lane-dense scalar results: lane0=a_start, lane1=a_end, lane2=new num_nodes
    lane = lax.broadcasted_iota(jnp.int32, (1, _LANES), 1)
    scal_ref[0] = jnp.where(lane == 0, a_start,
                  jnp.where(lane == 1, a_end,
                  jnp.where(lane == 2, num_nodes_new, 0)))


# ----------------------------------------------------------------------------
# One-time parameter preparation (hoisted out of the per-step hot loop)
# ----------------------------------------------------------------------------
def prepare_params(params, matmul_dtype=jnp.bfloat16):
    """Fold the activation-free MLP heads into single projections, stack the
    two head x-projections into one sublane-padded (8, 32) weight, and cast
    the MXU weights to bf16.  Call once, reuse every generation step."""
    w1 = params["wm1a"] @ params["wm1b"]                       # (32, 1)
    b1 = params["bm1a"] @ params["wm1b"] + params["bm1b"]      # (1, 1)
    w2 = params["wm2a"] @ params["wm2b"]                       # (64, 1)
    b2 = params["bm2a"] @ params["wm2b"] + params["bm2b"]      # (1, 1)
    w_heads = jnp.zeros((8, 32), jnp.float32)
    w_heads = w_heads.at[0].set(w1[:, 0]).at[1].set(w2[:32, 0])
    return {
        "wfc": params["wfc"].astype(matmul_dtype), "bfc": params["bfc"],
        "wg1": params["wg1"].astype(matmul_dtype), "bg1": params["bg1"],
        "wg2": params["wg2"].astype(matmul_dtype), "bg2": params["bg2"],
        "wg3": params["wg3"].astype(matmul_dtype), "bg3": params["bg3"],
        "w_heads": w_heads,
        "w2b": w2[32:, 0].reshape(1, 32).astype(jnp.float32),
        "hbias": jnp.concatenate([b1.reshape(1), b2.reshape(1)]).astype(jnp.float32),
    }


# ----------------------------------------------------------------------------
# Python wrapper: one pallas_call for a whole batch of graphs
# ----------------------------------------------------------------------------
def generator_forward(feat, adj, mask, num_nodes, prepped, *, max_nodes):
    """Batched Generator.forward over B independent padded graphs.

    feat: (B, Np, nfeat) f32, adj: (B, Np, Np) f32, mask: (B, 1, Np) f32
    (1.0 == mask_start True), num_nodes: (B,) int32; Np is the node axis
    padded to a multiple of 128 (>= max_nodes).
    Returns (p_start, a_start, p_end, a_end, G_new); p_* have shape
    (B, max_nodes); G_new holds the padded, in-kernel-updated graph arrays
    and feeds directly back into the next call.
    """
    B, Np, F = feat.shape
    vmem = pltpu.MemorySpace.VMEM
    smem = pltpu.MemorySpace.SMEM
    row3 = lambda g: (g, 0, 0)

    kernel = functools.partial(generator_kernel, max_nodes=max_nodes)

    in_specs = [
        pl.BlockSpec(memory_space=smem),                  # num_nodes (B,)
        pl.BlockSpec((1, Np, F), row3),                   # feat
        pl.BlockSpec((1, Np, Np), row3),                  # adj
        pl.BlockSpec((1, 1, Np), row3),                   # mask
        pl.BlockSpec(memory_space=vmem),                  # wfc
        pl.BlockSpec(memory_space=vmem),                  # bfc
        pl.BlockSpec(memory_space=vmem),                  # wg1
        pl.BlockSpec(memory_space=vmem),                  # bg1
        pl.BlockSpec(memory_space=vmem),                  # wg2
        pl.BlockSpec(memory_space=vmem),                  # bg2
        pl.BlockSpec(memory_space=vmem),                  # wg3
        pl.BlockSpec(memory_space=vmem),                  # bg3
        pl.BlockSpec(memory_space=vmem),                  # w_heads
        pl.BlockSpec(memory_space=vmem),                  # w2b
        pl.BlockSpec(memory_space=smem),                  # hbias (2,)
    ]
    out_shape = (
        jax.ShapeDtypeStruct((B, 1, Np), jnp.float32),    # p_start
        jax.ShapeDtypeStruct((B, 1, Np), jnp.float32),    # p_end
        jax.ShapeDtypeStruct((B, 1, _LANES), jnp.int32),  # a_start/a_end/num_nodes
        jax.ShapeDtypeStruct((B, Np, F), jnp.float32),    # feat'
        jax.ShapeDtypeStruct((B, Np, Np), jnp.float32),   # adj'
        jax.ShapeDtypeStruct((B, 1, Np), jnp.float32),    # mask'
    )
    out_specs = (
        pl.BlockSpec((1, 1, Np), row3),
        pl.BlockSpec((1, 1, Np), row3),
        pl.BlockSpec((1, 1, _LANES), row3),
        pl.BlockSpec((1, Np, F), row3),
        pl.BlockSpec((1, Np, Np), row3),
        pl.BlockSpec((1, 1, Np), row3),
    )

    outs = pl.pallas_call(
        kernel,
        grid=(B,),
        in_specs=in_specs,
        out_specs=out_specs,
        out_shape=out_shape,
        # in-place graph update: feat/adj/mask are read and rewritten
        input_output_aliases={1: 3, 2: 4, 3: 5},
        compiler_params=pltpu.CompilerParams(
            dimension_semantics=("parallel",),            # 2x on v7x (2 TCs)
            vmem_limit_bytes=48 * 1024 * 1024),
    )(num_nodes, feat, adj, mask,
      prepped["wfc"], prepped["bfc"], prepped["wg1"], prepped["bg1"],
      prepped["wg2"], prepped["bg2"], prepped["wg3"], prepped["bg3"],
      prepped["w_heads"], prepped["w2b"], prepped["hbias"])

    p_start_raw, p_end_raw, scal, feat_n, adj_n, mask_n = outs
    p_start = p_start_raw[:, 0, :max_nodes]
    p_end = p_end_raw[:, 0, :max_nodes]
    a_start = scal[:, 0, 0]
    a_end = scal[:, 0, 1]
    G_new = {"feat": feat_n, "adj": adj_n, "mask_start": mask_n,
             "num_nodes": scal[:, 0, 2]}
    return p_start, a_start, p_end, a_end, G_new


# ----------------------------------------------------------------------------
# Helpers for the demo
# ----------------------------------------------------------------------------
def init_params(key, nfeat):
    dims = {"fc": (nfeat, 256), "g1": (256, 128), "g2": (128, 64), "g3": (64, 32),
            "m1a": (32, 16), "m1b": (16, 1), "m2a": (64, 24), "m2b": (24, 1)}
    params = {}
    for name, (din, dout) in dims.items():
        key, kw, kb = jax.random.split(key, 3)
        params["w" + name] = (jax.random.normal(kw, (din, dout), jnp.float32)
                              * (1.0 / math.sqrt(din)))
        params["b" + name] = jax.random.normal(kb, (1, dout), jnp.float32) * 0.01
    return params


def pad_graphs(feat, adj, num_nodes, max_nodes, pad_to=128):
    """Pad the node axis to a lane-dense multiple of 128 and build the float
    mask_start row (1.0 == padded / not-yet-generated node)."""
    B = feat.shape[0]
    Np = ((max(max_nodes, 1) + pad_to - 1) // pad_to) * pad_to
    feat_p = jnp.zeros((B, Np, feat.shape[-1]), jnp.float32)
    feat_p = feat_p.at[:, :max_nodes, :].set(feat)
    adj_p = jnp.zeros((B, Np, Np), jnp.float32)
    adj_p = adj_p.at[:, :max_nodes, :max_nodes].set(adj)
    node = jnp.arange(Np)[None, :]
    mask = (node >= num_nodes[:, None]).astype(jnp.float32).reshape(B, 1, Np)
    return feat_p, adj_p, mask, Np


if __name__ == "__main__":
    B = 2            # independent graphs / rollouts batched on the grid
    MAXN = 8         # maxNumNodes (small for the test)
    NFEAT = 128      # nfeat

    key = jax.random.PRNGKey(0)
    kf, ka, kp = jax.random.split(key, 3)

    feat = jax.random.normal(kf, (B, MAXN, NFEAT), jnp.float32)
    adj = (jax.random.uniform(ka, (B, MAXN, MAXN)) > 0.5).astype(jnp.float32)
    adj = jnp.maximum(adj, jnp.swapaxes(adj, -1, -2))        # symmetric
    num_nodes = jnp.array([1, 2], jnp.int32)

    params = init_params(kp, NFEAT)
    prepped = prepare_params(params)                          # one-time folding

    feat_p, adj_p, mask_p, Np = pad_graphs(feat, adj, num_nodes, MAXN)

    fwd = jax.jit(generator_forward, static_argnames=("max_nodes",))

    # autoregressive step 1
    p_start, a_start, p_end, a_end, G = fwd(
        feat_p, adj_p, mask_p, num_nodes, prepped, max_nodes=MAXN)
    # autoregressive step 2: updated graph feeds straight back in (no host glue)
    p_start2, a_start2, p_end2, a_end2, G2 = fwd(
        G["feat"], G["adj"], G["mask_start"], G["num_nodes"],
        prepped, max_nodes=MAXN)

    jax.block_until_ready((p_start, a_start, p_end, a_end,
                           p_start2, a_start2, p_end2, a_end2,
                           G2["feat"], G2["adj"], G2["mask_start"],
                           G2["num_nodes"]))
    print("KERNEL_OK")
</pallas_src>

<mosaic_0001>
module attributes {stable_mosaic.version = 11 : i64} {
  func.func @generator_kernel(%arg0: i32, %arg1: memref<2xi32, #tpu.memory_space<smem>>, %arg2: memref<1x128x128xf32, #tpu.memory_space<vmem>>, %arg3: memref<1x128x128xf32, #tpu.memory_space<vmem>>, %arg4: memref<1x1x128xf32, #tpu.memory_space<vmem>>, %arg5: memref<128x256xbf16, #tpu.memory_space<vmem>>, %arg6: memref<1x256xf32, #tpu.memory_space<vmem>>, %arg7: memref<256x128xbf16, #tpu.memory_space<vmem>>, %arg8: memref<1x128xf32, #tpu.memory_space<vmem>>, %arg9: memref<128x64xbf16, #tpu.memory_space<vmem>>, %arg10: memref<1x64xf32, #tpu.memory_space<vmem>>, %arg11: memref<64x32xbf16, #tpu.memory_space<vmem>>, %arg12: memref<1x32xf32, #tpu.memory_space<vmem>>, %arg13: memref<8x32xf32, #tpu.memory_space<vmem>>, %arg14: memref<1x32xf32, #tpu.memory_space<vmem>>, %arg15: memref<2xf32, #tpu.memory_space<smem>>, %arg16: memref<1x1x128xf32, #tpu.memory_space<vmem>>, %arg17: memref<1x1x128xf32, #tpu.memory_space<vmem>>, %arg18: memref<1x1x128xi32, #tpu.memory_space<vmem>>, %arg19: memref<1x128x128xf32, #tpu.memory_space<vmem>>, %arg20: memref<1x128x128xf32, #tpu.memory_space<vmem>>, %arg21: memref<1x1x128xf32, #tpu.memory_space<vmem>>) attributes {dimension_semantics = [#tpu.dimension_semantics<parallel>], iteration_bounds = array<i64: 2>, scalar_prefetch = 0 : i64, scratch_operands = 0 : i64, tpu.core_type = #tpu.core_type<tc>, window_params = [{transform_indices = @transform_0, window_bounds = array<i64: 2>}, {transform_indices = @transform_1, window_bounds = array<i64: 1, 128, 128>}, {transform_indices = @transform_2, window_bounds = array<i64: 1, 128, 128>}, {transform_indices = @transform_3, window_bounds = array<i64: 1, 1, 128>}, {pipeline_mode = #tpu.pipeline_mode<synchronous>, transform_indices = @transform_4, window_bounds = array<i64: 128, 256>}, {pipeline_mode = #tpu.pipeline_mode<synchronous>, transform_indices = @transform_5, window_bounds = array<i64: 1, 256>}, {pipeline_mode = #tpu.pipeline_mode<synchronous>, transform_indices = @transform_6, window_bounds = array<i64: 256, 128>}, {pipeline_mode = #tpu.pipeline_mode<synchronous>, transform_indices = @transform_7, window_bounds = array<i64: 1, 128>}, {pipeline_mode = #tpu.pipeline_mode<synchronous>, transform_indices = @transform_8, window_bounds = array<i64: 128, 64>}, {pipeline_mode = #tpu.pipeline_mode<synchronous>, transform_indices = @transform_9, window_bounds = array<i64: 1, 64>}, {pipeline_mode = #tpu.pipeline_mode<synchronous>, transform_indices = @transform_10, window_bounds = array<i64: 64, 32>}, {pipeline_mode = #tpu.pipeline_mode<synchronous>, transform_indices = @transform_11, window_bounds = array<i64: 1, 32>}, {pipeline_mode = #tpu.pipeline_mode<synchronous>, transform_indices = @transform_12, window_bounds = array<i64: 8, 32>}, {pipeline_mode = #tpu.pipeline_mode<synchronous>, transform_indices = @transform_13, window_bounds = array<i64: 1, 32>}, {transform_indices = @transform_14, window_bounds = array<i64: 2>}, {transform_indices = @transform_15, window_bounds = array<i64: 1, 1, 128>}, {transform_indices = @transform_16, window_bounds = array<i64: 1, 1, 128>}, {transform_indices = @transform_17, window_bounds = array<i64: 1, 1, 128>}, {transform_indices = @transform_18, window_bounds = array<i64: 1, 128, 128>}, {transform_indices = @transform_19, window_bounds = array<i64: 1, 128, 128>}, {transform_indices = @transform_20, window_bounds = array<i64: 1, 1, 128>}]} {
    %c0 = arith.constant 0 : index
    %c0_0 = arith.constant 0 : index
    %c0_1 = arith.constant 0 : index
    %0 = vector.load %arg2[%c0, %c0_0, %c0_1] : memref<1x128x128xf32, #tpu.memory_space<vmem>>, vector<1x128x128xf32>
    %1 = vector.shape_cast %0 : vector<1x128x128xf32> to vector<128x128xf32>
    %c0_2 = arith.constant 0 : index
    %c0_3 = arith.constant 0 : index
    %c0_4 = arith.constant 0 : index
    %2 = vector.load %arg3[%c0_2, %c0_3, %c0_4] : memref<1x128x128xf32, #tpu.memory_space<vmem>>, vector<1x128x128xf32>
    %3 = vector.shape_cast %2 : vector<1x128x128xf32> to vector<128x128xf32>
    %c0_5 = arith.constant 0 : index
    %c0_6 = arith.constant 0 : index
    %c0_7 = arith.constant 0 : index
    %4 = vector.load %arg4[%c0_5, %c0_6, %c0_7] : memref<1x1x128xf32, #tpu.memory_space<vmem>>, vector<1x1x128xf32>
    %5 = vector.shape_cast %4 : vector<1x1x128xf32> to vector<1x128xf32>
    %6 = arith.index_cast %arg0 : i32 to index
    %7 = memref.load %arg1[%6] : memref<2xi32, #tpu.memory_space<smem>>
    %8 = arith.truncf %3 : vector<128x128xf32> to vector<128x128xbf16>
    %9 = arith.truncf %1 : vector<128x128xf32> to vector<128x128xbf16>
    %c0_8 = arith.constant 0 : index
    %c0_9 = arith.constant 0 : index
    %10 = vector.load %arg5[%c0_8, %c0_9] : memref<128x256xbf16, #tpu.memory_space<vmem>>, vector<128x256xbf16>
    %cst = arith.constant dense<0.000000e+00> : vector<128x256xf32>
    %11 = tpu.matmul %9, %10, %cst {dimension_numbers = #tpu.dot_dimension_numbers<[1], [0], [0], [1], [0, 0, 1, 1], [], []>} : vector<128x128xbf16>, vector<128x256xbf16>, vector<128x256xf32> -> vector<128x256xf32>
    %c0_10 = arith.constant 0 : index
    %c0_11 = arith.constant 0 : index
    %12 = vector.load %arg6[%c0_10, %c0_11] : memref<1x256xf32, #tpu.memory_space<vmem>>, vector<1x256xf32>
    %13 = vector.broadcast %12 : vector<1x256xf32> to vector<128x256xf32>
    %14 = arith.addf %11, %13 : vector<128x256xf32>
    %cst_12 = arith.constant 0.000000e+00 : f32
    %cst_13 = arith.constant 6.000000e+00 : f32
    %15 = vector.broadcast %cst_12 : f32 to vector<128x256xf32>
    %16 = arith.maximumf %15, %14 : vector<128x256xf32>
    %17 = vector.broadcast %cst_13 : f32 to vector<128x256xf32>
    %18 = arith.minimumf %17, %16 : vector<128x256xf32>
    %19 = arith.truncf %18 : vector<128x256xf32> to vector<128x256xbf16>
    %c0_14 = arith.constant 0 : index
    %c0_15 = arith.constant 0 : index
    %20 = vector.load %arg7[%c0_14, %c0_15] : memref<256x128xbf16, #tpu.memory_space<vmem>>, vector<256x128xbf16>
    %cst_16 = arith.constant dense<0.000000e+00> : vector<128x128xf32>
    %21 = tpu.matmul %19, %20, %cst_16 {dimension_numbers = #tpu.dot_dimension_numbers<[1], [0], [0], [1], [0, 0, 1, 1], [], []>} : vector<128x256xbf16>, vector<256x128xbf16>, vector<128x128xf32> -> vector<128x128xf32>
    %22 = arith.truncf %21 : vector<128x128xf32> to vector<128x128xbf16>
    %cst_17 = arith.constant dense<0.000000e+00> : vector<128x128xf32>
    %23 = tpu.matmul %8, %22, %cst_17 {dimension_numbers = #tpu.dot_dimension_numbers<[1], [0], [0], [1], [0, 0, 1, 1], [], []>} : vector<128x128xbf16>, vector<128x128xbf16>, vector<128x128xf32> -> vector<128x128xf32>
    %c0_18 = arith.constant 0 : index
    %c0_19 = arith.constant 0 : index
    %24 = vector.load %arg8[%c0_18, %c0_19] : memref<1x128xf32, #tpu.memory_space<vmem>>, vector<1x128xf32>
    %25 = vector.broadcast %24 : vector<1x128xf32> to vector<128x128xf32>
    %26 = arith.addf %23, %25 : vector<128x128xf32>
    %cst_20 = arith.constant 0.000000e+00 : f32
    %cst_21 = arith.constant 6.000000e+00 : f32
    %27 = vector.broadcast %cst_20 : f32 to vector<128x128xf32>
    %28 = arith.maximumf %27, %26 : vector<128x128xf32>
    %29 = vector.broadcast %cst_21 : f32 to vector<128x128xf32>
    %30 = arith.minimumf %29, %28 : vector<128x128xf32>
    %31 = arith.truncf %30 : vector<128x128xf32> to vector<128x128xbf16>
    %c0_22 = arith.constant 0 : index
    %c0_23 = arith.constant 0 : index
    %32 = vector.load %arg9[%c0_22, %c0_23] : memref<128x64xbf16, #tpu.memory_space<vmem>>, vector<128x64xbf16>
    %cst_24 = arith.constant dense<0.000000e+00> : vector<128x64xf32>
    %33 = tpu.matmul %31, %32, %cst_24 {dimension_numbers = #tpu.dot_dimension_numbers<[1], [0], [0], [1], [0, 0, 1, 1], [], []>} : vector<128x128xbf16>, vector<128x64xbf16>, vector<128x64xf32> -> vector<128x64xf32>
    %34 = arith.truncf %33 : vector<128x64xf32> to vector<128x64xbf16>
    %cst_25 = arith.constant dense<0.000000e+00> : vector<128x64xf32>
    %35 = tpu.matmul %8, %34, %cst_25 {dimension_numbers = #tpu.dot_dimension_numbers<[1], [0], [0], [1], [0, 0, 1, 1], [], []>} : vector<128x128xbf16>, vector<128x64xbf16>, vector<128x64xf32> -> vector<128x64xf32>
    %c0_26 = arith.constant 0 : index
    %c0_27 = arith.constant 0 : index
    %36 = vector.load %arg10[%c0_26, %c0_27] : memref<1x64xf32, #tpu.memory_space<vmem>>, vector<1x64xf32>
    %37 = vector.broadcast %36 : vector<1x64xf32> to vector<128x64xf32>
    %38 = arith.addf %35, %37 : vector<128x64xf32>
    %cst_28 = arith.constant 0.000000e+00 : f32
    %cst_29 = arith.constant 6.000000e+00 : f32
    %39 = vector.broadcast %cst_28 : f32 to vector<128x64xf32>
    %40 = arith.maximumf %39, %38 : vector<128x64xf32>
    %41 = vector.broadcast %cst_29 : f32 to vector<128x64xf32>
    %42 = arith.minimumf %41, %40 : vector<128x64xf32>
    %43 = arith.truncf %42 : vector<128x64xf32> to vector<128x64xbf16>
    %c0_30 = arith.constant 0 : index
    %c0_31 = arith.constant 0 : index
    %44 = vector.load %arg11[%c0_30, %c0_31] : memref<64x32xbf16, #tpu.memory_space<vmem>>, vector<64x32xbf16>
    %cst_32 = arith.constant dense<0.000000e+00> : vector<128x32xf32>
    %45 = tpu.matmul %43, %44, %cst_32 {dimension_numbers = #tpu.dot_dimension_numbers<[1], [0], [0], [1], [0, 0, 1, 1], [], []>} : vector<128x64xbf16>, vector<64x32xbf16>, vector<128x32xf32> -> vector<128x32xf32>
    %46 = arith.truncf %45 : vector<128x32xf32> to vector<128x32xbf16>
    %cst_33 = arith.constant dense<0.000000e+00> : vector<128x32xf32>
    %47 = tpu.matmul %8, %46, %cst_33 {dimension_numbers = #tpu.dot_dimension_numbers<[1], [0], [0], [1], [0, 0, 1, 1], [], []>} : vector<128x128xbf16>, vector<128x32xbf16>, vector<128x32xf32> -> vector<128x32xf32>
    %c0_34 = arith.constant 0 : index
    %c0_35 = arith.constant 0 : index
    %48 = vector.load %arg12[%c0_34, %c0_35] : memref<1x32xf32, #tpu.memory_space<vmem>>, vector<1x32xf32>
    %49 = vector.broadcast %48 : vector<1x32xf32> to vector<128x32xf32>
    %50 = arith.addf %47, %49 : vector<128x32xf32>
    %cst_36 = arith.constant 0.000000e+00 : f32
    %cst_37 = arith.constant 6.000000e+00 : f32
    %51 = vector.broadcast %cst_36 : f32 to vector<128x32xf32>
    %52 = arith.maximumf %51, %50 : vector<128x32xf32>
    %53 = vector.broadcast %cst_37 : f32 to vector<128x32xf32>
    %54 = arith.minimumf %53, %52 : vector<128x32xf32>
    %c0_38 = arith.constant 0 : index
    %c0_39 = arith.constant 0 : index
    %55 = vector.load %arg13[%c0_38, %c0_39] : memref<8x32xf32, #tpu.memory_space<vmem>>, vector<8x32xf32>
    %cst_40 = arith.constant dense<0.000000e+00> : vector<8x128xf32>
    %56 = tpu.matmul %55, %54, %cst_40 {dimension_numbers = #tpu.dot_dimension_numbers<[1], [1], [0], [0], [0, 0, 1, 0], [], []>} : vector<8x32xf32>, vector<128x32xf32>, vector<8x128xf32> -> vector<8x128xf32>
    %c0_41 = arith.constant 0 : index
    %57 = memref.load %arg15[%c0_41] : memref<2xf32, #tpu.memory_space<smem>>
    %c1 = arith.constant 1 : index
    %58 = memref.load %arg15[%c1] : memref<2xf32, #tpu.memory_space<smem>>
    %59 = tpu.iota {dimensions = array<i32: 1>} : vector<1x128xi32>
    %60 = arith.sitofp %59 : vector<1x128xi32> to vector<1x128xf32>
    %61 = tpu.iota {dimensions = array<i32: 0>} : vector<128x1xi32>
    %c8_i32 = arith.constant 8 : i32
    %62 = vector.broadcast %c8_i32 : i32 to vector<1x128xi32>
    %63 = arith.cmpi sge, %59, %62 : vector<1x128xi32>
    %cst_42 = arith.constant 5.000000e-01 : f32
    %64 = vector.broadcast %cst_42 : f32 to vector<1x128xf32>
    %65 = arith.cmpf ogt, %5, %64 : vector<1x128xf32>
    %66 = vector.extract_strided_slice %56 {offsets = [0, 0], sizes = [1, 128], strides = [1, 1]} : vector<8x128xf32> to vector<1x128xf32>
    %67 = vector.broadcast %57 : f32 to vector<1x128xf32>
    %68 = arith.addf %66, %67 : vector<1x128xf32>
    %cst_43 = arith.constant 0.000000e+00 : f32
    %69 = vector.broadcast %cst_43 : f32 to vector<1x128xf32>
    %70 = arith.select %65, %69, %68 : vector<1x128xi1>, vector<1x128xf32>
    %cst_44 = arith.constant -1.000000e+30 : f32
    %71 = vector.broadcast %cst_44 : f32 to vector<1x128xf32>
    %72 = arith.select %63, %71, %70 : vector<1x128xi1>, vector<1x128xf32>
    %cst_45 = arith.constant dense<0xFF800000> : vector<1xf32>
    %73 = vector.multi_reduction <maximumf>, %72, %cst_45 [1] : vector<1x128xf32> to vector<1xf32>
    %74 = vector.shape_cast %73 : vector<1xf32> to vector<1x1xf32>
    %75 = vector.broadcast %74 : vector<1x1xf32> to vector<1x128xf32>
    %76 = arith.subf %72, %75 : vector<1x128xf32>
    %77 = math.exp %76 : vector<1x128xf32>
    %cst_46 = arith.constant dense<0.000000e+00> : vector<1xf32>
    %78 = vector.multi_reduction <add>, %77, %cst_46 [1] : vector<1x128xf32> to vector<1xf32>
    %79 = vector.shape_cast %78 : vector<1xf32> to vector<1x1xf32>
    %80 = tpu.reciprocal %79 {approx = true} : vector<1x1xf32> -> vector<1x1xf32>
    %81 = vector.broadcast %80 : vector<1x1xf32> to vector<1x128xf32>
    %82 = arith.mulf %77, %81 : vector<1x128xf32>
    %c0_47 = arith.constant 0 : index
    %c0_48 = arith.constant 0 : index
    %c0_49 = arith.constant 0 : index
    %83 = vector.load %arg16[%c0_47, %c0_48, %c0_49] : memref<1x1x128xf32, #tpu.memory_space<vmem>>, vector<1x1x128xf32>
    %84 = vector.shape_cast %83 : vector<1x1x128xf32> to vector<1x128xf32>
    %85 = vector.shape_cast %82 : vector<1x128xf32> to vector<1x1x128xf32>
    tpu.vector_store %arg16[%c0_47, %c0_48, %c0_49], %85 {strides = array<i32>} : memref<1x1x128xf32, #tpu.memory_space<vmem>>, vector<1x1x128xf32>,
    %cst_50 = arith.constant -1.000000e+00 : f32
    %86 = vector.broadcast %cst_50 : f32 to vector<1x128xf32>
    %87 = arith.select %65, %86, %82 : vector<1x128xi1>, vector<1x128xf32>
    %cst_51 = arith.constant -2.000000e+00 : f32
    %88 = vector.broadcast %cst_51 : f32 to vector<1x128xf32>
    %89 = arith.select %63, %88, %87 : vector<1x128xi1>, vector<1x128xf32>
    %cst_52 = arith.constant dense<0xFF800000> : vector<1xf32>
    %90 = vector.multi_reduction <maximumf>, %89, %cst_52 [1] : vector<1x128xf32> to vector<1xf32>
    %91 = vector.shape_cast %90 : vector<1xf32> to vector<1x1xf32>
    %92 = vector.broadcast %91 : vector<1x1xf32> to vector<1x128xf32>
    %93 = arith.cmpf oeq, %89, %92 : vector<1x128xf32>
    %cst_53 = arith.constant 1.280000e+02 : f32
    %94 = vector.broadcast %cst_53 : f32 to vector<1x128xf32>
    %95 = arith.select %93, %60, %94 : vector<1x128xi1>, vector<1x128xf32>
    %cst_54 = arith.constant dense<0x7F800000> : vector<1xf32>
    %96 = vector.multi_reduction <minimumf>, %95, %cst_54 [1] : vector<1x128xf32> to vector<1xf32>
    %97 = vector.shape_cast %96 : vector<1xf32> to vector<1x1xf32>
    %98 = arith.fptosi %97 : vector<1x1xf32> to vector<1x1xi32>
    %99 = vector.broadcast %98 : vector<1x1xi32> to vector<1x128xi32>
    %100 = arith.cmpi eq, %59, %99 : vector<1x128xi32>
    %101 = arith.extui %100 : vector<1x128xi1> to vector<1x128xi32>
    %102 = arith.sitofp %101 : vector<1x128xi32> to vector<1x128xf32>
    %cst_55 = arith.constant dense<0.000000e+00> : vector<1x32xf32>
    %103 = tpu.matmul %102, %54, %cst_55 {dimension_numbers = #tpu.dot_dimension_numbers<[1], [0], [0], [1], [0, 0, 1, 1], [], []>} : vector<1x128xf32>, vector<128x32xf32>, vector<1x32xf32> -> vector<1x32xf32>
    %c0_56 = arith.constant 0 : index
    %c0_57 = arith.constant 0 : index
    %104 = vector.load %arg14[%c0_56, %c0_57] : memref<1x32xf32, #tpu.memory_space<vmem>>, vector<1x32xf32>
    %105 = arith.mulf %103, %104 : vector<1x32xf32>
    %cst_58 = arith.constant dense<0.000000e+00> : vector<1xf32>
    %106 = vector.multi_reduction <add>, %105, %cst_58 [1] : vector<1x32xf32> to vector<1xf32>
    %107 = vector.shape_cast %106 : vector<1xf32> to vector<1x1xf32>
    %108 = vector.extract_strided_slice %56 {offsets = [1, 0], sizes = [1, 128], strides = [1, 1]} : vector<8x128xf32> to vector<1x128xf32>
    %109 = vector.broadcast %107 : vector<1x1xf32> to vector<1x128xf32>
    %110 = arith.addf %108, %109 : vector<1x128xf32>
    %111 = vector.broadcast %58 : f32 to vector<1x128xf32>
    %112 = arith.addf %110, %111 : vector<1x128xf32>
    %cst_59 = arith.constant 0.000000e+00 : f32
    %113 = vector.broadcast %cst_59 : f32 to vector<1x128xf32>
    %114 = arith.select %100, %113, %112 : vector<1x128xi1>, vector<1x128xf32>
    %cst_60 = arith.constant -1.000000e+30 : f32
    %115 = vector.broadcast %cst_60 : f32 to vector<1x128xf32>
    %116 = arith.select %63, %115, %114 : vector<1x128xi1>, vector<1x128xf32>
    %cst_61 = arith.constant dense<0xFF800000> : vector<1xf32>
    %117 = vector.multi_reduction <maximumf>, %116, %cst_61 [1] : vector<1x128xf32> to vector<1xf32>
    %118 = vector.shape_cast %117 : vector<1xf32> to vector<1x1xf32>
    %119 = vector.broadcast %118 : vector<1x1xf32> to vector<1x128xf32>
    %120 = arith.subf %116, %119 : vector<1x128xf32>
    %121 = math.exp %120 : vector<1x128xf32>
    %cst_62 = arith.constant dense<0.000000e+00> : vector<1xf32>
    %122 = vector.multi_reduction <add>, %121, %cst_62 [1] : vector<1x128xf32> to vector<1xf32>
    %123 = vector.shape_cast %122 : vector<1xf32> to vector<1x1xf32>
    %124 = tpu.reciprocal %123 {approx = true} : vector<1x1xf32> -> vector<1x1xf32>
    %125 = vector.broadcast %124 : vector<1x1xf32> to vector<1x128xf32>
    %126 = arith.mulf %121, %125 : vector<1x128xf32>
    %c0_63 = arith.constant 0 : index
    %c0_64 = arith.constant 0 : index
    %c0_65 = arith.constant 0 : index
    %127 = vector.load %arg17[%c0_63, %c0_64, %c0_65] : memref<1x1x128xf32, #tpu.memory_space<vmem>>, vector<1x1x128xf32>
    %128 = vector.shape_cast %127 : vector<1x1x128xf32> to vector<1x128xf32>
    %129 = vector.shape_cast %126 : vector<1x128xf32> to vector<1x1x128xf32>
    tpu.vector_store %arg17[%c0_63, %c0_64, %c0_65], %129 {strides = array<i32>} : memref<1x1x128xf32, #tpu.memory_space<vmem>>, vector<1x1x128xf32>,
    %cst_66 = arith.constant -1.000000e+00 : f32
    %130 = vector.broadcast %cst_66 : f32 to vector<1x128xf32>
    %131 = arith.select %100, %130, %126 : vector<1x128xi1>, vector<1x128xf32>
    %cst_67 = arith.constant -2.000000e+00 : f32
    %132 = vector.broadcast %cst_67 : f32 to vector<1x128xf32>
    %133 = arith.select %63, %132, %131 : vector<1x128xi1>, vector<1x128xf32>
    %cst_68 = arith.constant dense<0xFF800000> : vector<1xf32>
    %134 = vector.multi_reduction <maximumf>, %133, %cst_68 [1] : vector<1x128xf32> to vector<1xf32>
    %135 = vector.shape_cast %134 : vector<1xf32> to vector<1x1xf32>
    %136 = vector.broadcast %135 : vector<1x1xf32> to vector<1x128xf32>
    %137 = arith.cmpf oeq, %133, %136 : vector<1x128xf32>
    %cst_69 = arith.constant 1.280000e+02 : f32
    %138 = vector.broadcast %cst_69 : f32 to vector<1x128xf32>
    %139 = arith.select %137, %60, %138 : vector<1x128xi1>, vector<1x128xf32>
    %cst_70 = arith.constant dense<0x7F800000> : vector<1xf32>
    %140 = vector.multi_reduction <minimumf>, %139, %cst_70 [1] : vector<1x128xf32> to vector<1xf32>
    %141 = vector.shape_cast %140 : vector<1xf32> to vector<1x1xf32>
    %142 = arith.fptosi %141 : vector<1x1xf32> to vector<1x1xi32>
    %143 = vector.broadcast %142 : vector<1x1xi32> to vector<1x128xi32>
    %144 = arith.cmpi eq, %59, %143 : vector<1x128xi32>
    %cst_71 = arith.constant 0.000000e+00 : f32
    %145 = vector.broadcast %cst_71 : f32 to vector<1x128xf32>
    %146 = arith.select %144, %5, %145 : vector<1x128xi1>, vector<1x128xf32>
    %cst_72 = arith.constant dense<0.000000e+00> : vector<1xf32>
    %147 = vector.multi_reduction <add>, %146, %cst_72 [1] : vector<1x128xf32> to vector<1xf32>
    %148 = vector.shape_cast %147 : vector<1xf32> to vector<1x1xf32>
    %cst_73 = arith.constant 5.000000e-01 : f32
    %149 = vector.broadcast %cst_73 : f32 to vector<1x1xf32>
    %150 = arith.cmpf ogt, %148, %149 : vector<1x1xf32>
    %151 = vector.broadcast %7 : i32 to vector<1x1xi32>
    %152 = arith.select %150, %151, %142 : vector<1x1xi1>, vector<1x1xi32>
    %153 = vector.broadcast %98 : vector<1x1xi32> to vector<1x128xi32>
    %154 = arith.cmpi eq, %59, %153 : vector<1x128xi32>
    %155 = vector.broadcast %152 : vector<1x1xi32> to vector<1x128xi32>
    %156 = arith.cmpi eq, %59, %155 : vector<1x128xi32>
    %157 = vector.broadcast %98 : vector<1x1xi32> to vector<128x1xi32>
    %158 = arith.cmpi eq, %61, %157 : vector<128x1xi32>
    %159 = vector.broadcast %152 : vector<1x1xi32> to vector<128x1xi32>
    %160 = arith.cmpi eq, %61, %159 : vector<128x1xi32>
    %161 = vector.broadcast %160 : vector<128x1xi1> to vector<128x128xi1>
    %162 = vector.broadcast %154 : vector<1x128xi1> to vector<128x128xi1>
    %163 = arith.andi %161, %162 : vector<128x128xi1>
    %164 = vector.broadcast %158 : vector<128x1xi1> to vector<128x128xi1>
    %165 = vector.broadcast %156 : vector<1x128xi1> to vector<128x128xi1>
    %166 = arith.andi %164, %165 : vector<128x128xi1>
    %167 = arith.ori %163, %166 : vector<128x128xi1>
    %cst_74 = arith.constant 1.000000e+00 : f32
    %168 = vector.broadcast %cst_74 : f32 to vector<128x128xf32>
    %169 = arith.select %167, %168, %3 : vector<128x128xi1>, vector<128x128xf32>
    %c0_75 = arith.constant 0 : index
    %c0_76 = arith.constant 0 : index
    %c0_77 = arith.constant 0 : index
    %170 = vector.load %arg20[%c0_75, %c0_76, %c0_77] : memref<1x128x128xf32, #tpu.memory_space<vmem>>, vector<1x128x128xf32>
    %171 = vector.shape_cast %170 : vector<1x128x128xf32> to vector<128x128xf32>
    %172 = vector.shape_cast %169 : vector<128x128xf32> to vector<1x128x128xf32>
    tpu.vector_store %arg20[%c0_75, %c0_76, %c0_77], %172 {strides = array<i32>} : memref<1x128x128xf32, #tpu.memory_space<vmem>>, vector<1x128x128xf32>,
    %173 = arith.extui %144 : vector<1x128xi1> to vector<1x128xi32>
    %174 = arith.sitofp %173 : vector<1x128xi32> to vector<1x128xf32>
    %cst_78 = arith.constant dense<0.000000e+00> : vector<1x128xf32>
    %175 = tpu.matmul %174, %1, %cst_78 {dimension_numbers = #tpu.dot_dimension_numbers<[1], [0], [0], [1], [0, 0, 1, 1], [], []>} : vector<1x128xf32>, vector<128x128xf32>, vector<1x128xf32> -> vector<1x128xf32>
    %176 = vector.broadcast %7 : i32 to vector<128x1xi32>
    %177 = arith.cmpi eq, %61, %176 : vector<128x1xi32>
    %178 = vector.broadcast %150 : vector<1x1xi1> to vector<128x1xi1>
    %179 = arith.andi %178, %177 : vector<128x1xi1>
    %180 = vector.shape_cast %179 : vector<128x1xi1> to vector<128x1xi1>
    %181 = vector.broadcast %180 : vector<128x1xi1> to vector<128x128xi1>
    %182 = vector.shape_cast %175 : vector<1x128xf32> to vector<1x128xf32>
    %183 = vector.broadcast %182 : vector<1x128xf32> to vector<128x128xf32>
    %184 = arith.select %181, %183, %1 : vector<128x128xi1>, vector<128x128xf32>
    %c0_79 = arith.constant 0 : index
    %c0_80 = arith.constant 0 : index
    %c0_81 = arith.constant 0 : index
    %185 = vector.load %arg19[%c0_79, %c0_80, %c0_81] : memref<1x128x128xf32, #tpu.memory_space<vmem>>, vector<1x128x128xf32>
    %186 = vector.shape_cast %185 : vector<1x128x128xf32> to vector<128x128xf32>
    %187 = vector.shape_cast %184 : vector<128x128xf32> to vector<1x128x128xf32>
    tpu.vector_store %arg19[%c0_79, %c0_80, %c0_81], %187 {strides = array<i32>} : memref<1x128x128xf32, #tpu.memory_space<vmem>>, vector<1x128x128xf32>,
    %188 = vector.broadcast %7 : i32 to vector<1x128xi32>
    %189 = arith.cmpi eq, %59, %188 : vector<1x128xi32>
    %190 = vector.broadcast %150 : vector<1x1xi1> to vector<1x128xi1>
    %191 = arith.andi %190, %189 : vector<1x128xi1>
    %cst_82 = arith.constant 0.000000e+00 : f32
    %192 = vector.broadcast %cst_82 : f32 to vector<1x128xf32>
    %193 = arith.select %191, %192, %5 : vector<1x128xi1>, vector<1x128xf32>
    %c0_83 = arith.constant 0 : index
    %c0_84 = arith.constant 0 : index
    %c0_85 = arith.constant 0 : index
    %194 = vector.load %arg21[%c0_83, %c0_84, %c0_85] : memref<1x1x128xf32, #tpu.memory_space<vmem>>, vector<1x1x128xf32>
    %195 = vector.shape_cast %194 : vector<1x1x128xf32> to vector<1x128xf32>
    %196 = vector.shape_cast %193 : vector<1x128xf32> to vector<1x1x128xf32>
    tpu.vector_store %arg21[%c0_83, %c0_84, %c0_85], %196 {strides = array<i32>} : memref<1x1x128xf32, #tpu.memory_space<vmem>>, vector<1x1x128xf32>,
    %197 = arith.extui %150 : vector<1x1xi1> to vector<1x1xi32>
    %198 = vector.broadcast %7 : i32 to vector<1x1xi32>
    %199 = arith.addi %198, %197 : vector<1x1xi32>
    %200 = tpu.iota {dimensions = array<i32: 1>} : vector<1x128xi32>
    %c0_i32 = arith.constant 0 : i32
    %201 = vector.broadcast %c0_i32 : i32 to vector<1x128xi32>
    %202 = arith.cmpi eq, %200, %201 : vector<1x128xi32>
    %c1_i32 = arith.constant 1 : i32
    %203 = vector.broadcast %c1_i32 : i32 to vector<1x128xi32>
    %204 = arith.cmpi eq, %200, %203 : vector<1x128xi32>
    %c2_i32 = arith.constant 2 : i32
    %205 = vector.broadcast %c2_i32 : i32 to vector<1x128xi32>
    %206 = arith.cmpi eq, %200, %205 : vector<1x128xi32>
    %c0_i32_86 = arith.constant 0 : i32
    %207 = vector.shape_cast %199 : vector<1x1xi32> to vector<1x1xi32>
    %208 = vector.broadcast %207 : vector<1x1xi32> to vector<1x128xi32>
    %209 = vector.broadcast %c0_i32_86 : i32 to vector<1x128xi32>
    %210 = arith.select %206, %208, %209 : vector<1x128xi1>, vector<1x128xi32>
    %211 = vector.shape_cast %142 : vector<1x1xi32> to vector<1x1xi32>
    %212 = vector.broadcast %211 : vector<1x1xi32> to vector<1x128xi32>
    %213 = arith.select %204, %212, %210 : vector<1x128xi1>, vector<1x128xi32>
    %214 = vector.shape_cast %98 : vector<1x1xi32> to vector<1x1xi32>
    %215 = vector.broadcast %214 : vector<1x1xi32> to vector<1x128xi32>
    %216 = arith.select %202, %215, %213 : vector<1x128xi1>, vector<1x128xi32>
    %c0_87 = arith.constant 0 : index
    %c0_88 = arith.constant 0 : index
    %c0_89 = arith.constant 0 : index
    %217 = vector.load %arg18[%c0_87, %c0_88, %c0_89] : memref<1x1x128xi32, #tpu.memory_space<vmem>>, vector<1x1x128xi32>
    %218 = vector.shape_cast %217 : vector<1x1x128xi32> to vector<1x128xi32>
    %219 = vector.shape_cast %216 : vector<1x128xi32> to vector<1x1x128xi32>
    tpu.vector_store %arg18[%c0_87, %c0_88, %c0_89], %219 {strides = array<i32>} : memref<1x1x128xi32, #tpu.memory_space<vmem>>, vector<1x1x128xi32>,
    return
  }
  func.func @transform_0(%arg0: i32) -> i32 {
    %c0_i32 = arith.constant 0 : i32
    %c0_i32_0 = arith.constant 0 : i32
    return %c0_i32 : i32
  }
  func.func @transform_1(%arg0: i32) -> (i32, i32, i32) {
    %c0_i32 = arith.constant 0 : i32
    %c0_i32_0 = arith.constant 0 : i32
    %c0_i32_1 = arith.constant 0 : i32
    return %arg0, %c0_i32, %c0_i32_0 : i32, i32, i32
  }
  func.func @transform_2(%arg0: i32) -> (i32, i32, i32) {
    %c0_i32 = arith.constant 0 : i32
    %c0_i32_0 = arith.constant 0 : i32
    %c0_i32_1 = arith.constant 0 : i32
    return %arg0, %c0_i32, %c0_i32_0 : i32, i32, i32
  }
  func.func @transform_3(%arg0: i32) -> (i32, i32, i32) {
    %c0_i32 = arith.constant 0 : i32
    %c0_i32_0 = arith.constant 0 : i32
    %c0_i32_1 = arith.constant 0 : i32
    return %arg0, %c0_i32, %c0_i32_0 : i32, i32, i32
  }
  func.func @transform_4(%arg0: i32) -> (i32, i32) {
    %c0_i32 = arith.constant 0 : i32
    %c0_i32_0 = arith.constant 0 : i32
    %c0_i32_1 = arith.constant 0 : i32
    return %c0_i32, %c0_i32_0 : i32, i32
  }
  func.func @transform_5(%arg0: i32) -> (i32, i32) {
    %c0_i32 = arith.constant 0 : i32
    %c0_i32_0 = arith.constant 0 : i32
    %c0_i32_1 = arith.constant 0 : i32
    return %c0_i32, %c0_i32_0 : i32, i32
  }
  func.func @transform_6(%arg0: i32) -> (i32, i32) {
    %c0_i32 = arith.constant 0 : i32
    %c0_i32_0 = arith.constant 0 : i32
    %c0_i32_1 = arith.constant 0 : i32
    return %c0_i32, %c0_i32_0 : i32, i32
  }
  func.func @transform_7(%arg0: i32) -> (i32, i32) {
    %c0_i32 = arith.constant 0 : i32
    %c0_i32_0 = arith.constant 0 : i32
    %c0_i32_1 = arith.constant 0 : i32
    return %c0_i32, %c0_i32_0 : i32, i32
  }
  func.func @transform_8(%arg0: i32) -> (i32, i32) {
    %c0_i32 = arith.constant 0 : i32
    %c0_i32_0 = arith.constant 0 : i32
    %c0_i32_1 = arith.constant 0 : i32
    return %c0_i32, %c0_i32_0 : i32, i32
  }
  func.func @transform_9(%arg0: i32) -> (i32, i32) {
    %c0_i32 = arith.constant 0 : i32
    %c0_i32_0 = arith.constant 0 : i32
    %c0_i32_1 = arith.constant 0 : i32
    return %c0_i32, %c0_i32_0 : i32, i32
  }
  func.func @transform_10(%arg0: i32) -> (i32, i32) {
    %c0_i32 = arith.constant 0 : i32
    %c0_i32_0 = arith.constant 0 : i32
    %c0_i32_1 = arith.constant 0 : i32
    return %c0_i32, %c0_i32_0 : i32, i32
  }
  func.func @transform_11(%arg0: i32) -> (i32, i32) {
    %c0_i32 = arith.constant 0 : i32
    %c0_i32_0 = arith.constant 0 : i32
    %c0_i32_1 = arith.constant 0 : i32
    return %c0_i32, %c0_i32_0 : i32, i32
  }
  func.func @transform_12(%arg0: i32) -> (i32, i32) {
    %c0_i32 = arith.constant 0 : i32
    %c0_i32_0 = arith.constant 0 : i32
    %c0_i32_1 = arith.constant 0 : i32
    return %c0_i32, %c0_i32_0 : i32, i32
  }
  func.func @transform_13(%arg0: i32) -> (i32, i32) {
    %c0_i32 = arith.constant 0 : i32
    %c0_i32_0 = arith.constant 0 : i32
    %c0_i32_1 = arith.constant 0 : i32
    return %c0_i32, %c0_i32_0 : i32, i32
  }
  func.func @transform_14(%arg0: i32) -> i32 {
    %c0_i32 = arith.constant 0 : i32
    %c0_i32_0 = arith.constant 0 : i32
    return %c0_i32 : i32
  }
  func.func @transform_15(%arg0: i32) -> (i32, i32, i32) {
    %c0_i32 = arith.constant 0 : i32
    %c0_i32_0 = arith.constant 0 : i32
    %c0_i32_1 = arith.constant 0 : i32
    return %arg0, %c0_i32, %c0_i32_0 : i32, i32, i32
  }
  func.func @transform_16(%arg0: i32) -> (i32, i32, i32) {
    %c0_i32 = arith.constant 0 : i32
    %c0_i32_0 = arith.constant 0 : i32
    %c0_i32_1 = arith.constant 0 : i32
    return %arg0, %c0_i32, %c0_i32_0 : i32, i32, i32
  }
  func.func @transform_17(%arg0: i32) -> (i32, i32, i32) {
    %c0_i32 = arith.constant 0 : i32
    %c0_i32_0 = arith.constant 0 : i32
    %c0_i32_1 = arith.constant 0 : i32
    return %arg0, %c0_i32, %c0_i32_0 : i32, i32, i32
  }
  func.func @transform_18(%arg0: i32) -> (i32, i32, i32) {
    %c0_i32 = arith.constant 0 : i32
    %c0_i32_0 = arith.constant 0 : i32
    %c0_i32_1 = arith.constant 0 : i32
    return %arg0, %c0_i32, %c0_i32_0 : i32, i32, i32
  }
  func.func @transform_19(%arg0: i32) -> (i32, i32, i32) {
    %c0_i32 = arith.constant 0 : i32
    %c0_i32_0 = arith.constant 0 : i32
    %c0_i32_1 = arith.constant 0 : i32
    return %arg0, %c0_i32, %c0_i32_0 : i32, i32, i32
  }
  func.func @transform_20(%arg0: i32) -> (i32, i32, i32) {
    %c0_i32 = arith.constant 0 : i32
    %c0_i32_0 = arith.constant 0 : i32
    %c0_i32_1 = arith.constant 0 : i32
    return %arg0, %c0_i32, %c0_i32_0 : i32, i32, i32
  }
}

</mosaic_0001>

<bundles_post_ra>
// kernel: generator_forward.1
= control target key start
LH: loop header
LB: loop body
LE: loop exit
PB: predicated region body
PF: predicated region fallthrough
CT: control target
= control target key end

     0   :  { %s5491_s0 = inlined_call_operand.vmem [shape: s32[2], index: 0, kind: input, shape index: {}]   ;;  %s5492_s1 = inlined_call_operand.vmem [shape: f32[2,128,128], index: 1, kind: input, shape index: {}, may-alias: {1,18}]   ;;  %s5493_s2 = inlined_call_operand.vmem [shape: f32[2,128,128], index: 2, kind: input, shape index: {}, may-alias: {2,19}]   ;;  %s5494_s3 = inlined_call_operand.vmem [shape: f32[2,1,128], index: 3, kind: input, shape index: {}, may-alias: {3,20}]   ;;  %s5495_s4 = inlined_call_operand.vmem [shape: bf16[128,256], index: 4, kind: input, shape index: {}]   ;;  %s5496_s5 = inlined_call_operand.vmem [shape: f32[1,256], index: 5, kind: input, shape index: {}]   ;;  %s5497_s6 = inlined_call_operand.vmem [shape: bf16[256,128], index: 6, kind: input, shape index: {}]   ;;  %s5498_s7 = inlined_call_operand.vmem [shape: f32[1,128], index: 7, kind: input, shape index: {}]   ;;  %s5499_s8 = inlined_call_operand.vmem [shape: bf16[128,64], index: 8, kind: input, shape index: {}]   ;;  %s5500_s9 = inlined_call_operand.vmem [shape: f32[1,64], index: 9, kind: input, shape index: {}]   ;;  %s5501_s10 = inlined_call_operand.vmem [shape: bf16[64,32], index: 10, kind: input, shape index: {}]   ;;  %s5502_s11 = inlined_call_operand.vmem [shape: f32[1,32], index: 11, kind: input, shape index: {}]   ;;  %s5503_s12 = inlined_call_operand.vmem [shape: f32[8,32], index: 12, kind: input, shape index: {}]   ;;  %s5504_s13 = inlined_call_operand.vmem [shape: f32[1,32], index: 13, kind: input, shape index: {}]   ;;  %s5505_s14 = inlined_call_operand.vmem [shape: f32[2], index: 14, kind: input, shape index: {}]   ;;  %s5506_s15 = inlined_call_operand.hbm [shape: f32[2,1,128], index: 15, kind: output, shape index: {0}]   ;;  %s5507_s16 = inlined_call_operand.hbm [shape: f32[2,1,128], index: 16, kind: output, shape index: {1}]   ;;  %s5508_s17 = inlined_call_operand.vmem [shape: s32[2,1,128], index: 17, kind: output, shape index: {2}]   ;;  %s5509_s18 = inlined_call_operand.vmem [shape: f32[2,128,128], index: 18, kind: output, shape index: {3}, may-alias: {1,18}]   ;;  %s5510_s19 = inlined_call_operand.vmem [shape: f32[2,128,128], index: 19, kind: output, shape index: {4}, may-alias: {2,19}]   ;;  %s5511_s20 = inlined_call_operand.vmem [shape: f32[2,1,128], index: 20, kind: output, shape index: {5}, may-alias: {3,20}]  }
   0x1   :  { %5531 = sst [smem:[#allocation26_spill]] %s5491_s0 }
   0x2   :  { %5532 = sst [smem:[#allocation27_spill]] %s5492_s1 }
   0x3   :  { %5533 = sst [smem:[#allocation28_spill]] %s5493_s2 }
   0x4   :  { %5534 = sst [smem:[#allocation29_spill]] %s5494_s3 }
   0x5   :  { %5535 = sst [smem:[#allocation30_spill]] %s5495_s4 }
   0x6   :  { %5536 = sst [smem:[#allocation31_spill]] %s5496_s5 }
   0x7   :  { %5537 = sst [smem:[#allocation32_spill]] %s5497_s6 }
   0x8   :  { %5538 = sst [smem:[#allocation33_spill]] %s5498_s7 }
   0x9   :  { %5539 = sst [smem:[#allocation34_spill]] %s5499_s8 }
   0xa   :  { %5540 = sst [smem:[#allocation35_spill]] %s5505_s14 }
   0xb   :  { %5541 = sst [smem:[#allocation36_spill]] %s5509_s18 }
   0xc   :  { %5542 = sst [smem:[#allocation37_spill]] %s5510_s19 }
   0xd   :  { %26 = vsyncpa [#allocation4], 0 }
   0xe   :  { %27 = vsyncpa [#allocation6], 0 }
   0xf   :  { %28 = vsyncpa [#allocation3], 0 }
  0x10   :  { %30 = vsyncpa [#allocation3 + $0x1], 0 }
  0x11   :  { %31 = vsyncpa [#allocation9], 0 }
  0x12   :  { %33 = vsyncpa [#allocation9 + $0x1], 0  ;;  %s4054_s1 = smov 0   ;;  %s4056_s22 = smov 0  }
  0x13   :  { %s4058_s23 = smov 0   ;;  %s4060_s24 = smov 0  }
  0x14 LB: > { %5543 = sst [smem:[#allocation14_spill]] %s3926_s1  ;;  %s4075_s2 = sadd.s32 4294967295, %s3938_s24   ;;  %s3938_s24 = sphi %s4060_s24, %s5727_s24   ;;  %s3934_s23 = sphi %s4058_s23, %s5729_s23   ;;  %s3930_s22 = sphi %s4056_s22, %s5731_s22   ;;  %s3926_s1 = sphi %s4054_s1, %s5730_s1  }
  0x15   : > { %5544 = sst [smem:[#allocation15_spill]] %s3934_s23  ;;  %s3033_s25 = sadd.s32 4294967294, %s3938_s24  }
  0x16   : > { %5545 = sst [smem:[#allocation16_spill]] %s3938_s24  ;;  %s4079_s3 = sadd.s32 1, %s3938_s24  }
  0x17   : > { %5546 = sst [smem:[#allocation17_spill]] %s4079_s3  ;;  %s376_s26 = sadd.s32 1, %s3934_s23 }
  0x18   : > { %s373_s27 = ssub.s32 %s3938_s24, %s4079_s3  ;;  %p386_p0 = scmp.ne.s32.totalorder %s3934_s23, %s3930_s22 }
  0x19   : > { %p374_p1 = scmp.eq.s32.totalorder %s373_s27, 0  ;;  %p387_p2 = scmp.eq.s32.totalorder %s4075_s2, 1 }
  0x1a   : > { %p392_p3 = scmp.ne.s32.totalorder %s3930_s22, %s3926_s1  ;;  %p393_p4 = scmp.eq.s32.totalorder %s3033_s25, 1 }
  0x1b   : > { %s4090_s28 = scalar_select %p374_p1, %s3934_s23, %s376_s26  }
  0x1c   : > { %p4092_p5 = por %p387_p2, %p386_p0  ;;  %p4096_p6 = por %p393_p4, %p392_p3 }
  0x1d   : > { %5547 = sst [smem:[#allocation18_spill]] %s4090_s28  ;;  %p3034_p7 = scmp.ge.s32.totalorder %s3938_s24, 1 }
  0x1e   : > { %s5548_s4 = scalar_select %p4092_p5, 1, 0 }
  0x1f   : > { %s5549_s29 = scalar_select %p4096_p6, 1, 0 }
  0x20   : > { %p530_p8 = scmp.lt.s32.totalorder %s3938_s24, 3  ;;  %p5517_p9 = scmp.eq.s32.totalorder %s4075_s2, 0 }
  0x21   : > { %5550 = sst [smem:[#allocation19_spill]] %s5549_s29  ;;  %s5552_s25 = sld [smem:[#allocation26_spill]] }
  0x22   : > { %p4103_p10 = pnand %p3034_p7, %p530_p8  ;;  %s5553_s14 = sld [smem:[#allocation35_spill]] }
  0x24   : > { %s5551_s30 = scalar_select %p4103_p10, 1, 0 }
  0x25   : > { %p3678_p11 = pneg %p4103_p10 }
  0x27   : > { %s543_s26 = sshll.u32 %s5552_s25, 4  ;;  %p4117_p12 = pnand %p5517_p9, %p3678_p11  ;;  %s544_s26 = int_to_ptr.vmem [resolvable:$true] %s543_s26 }
  0x28   : > { %s584_s23 = sshll.u32 %s5553_s14, 4  ;;  %s3806_s29 = scalar_lea.vmem %s544_s26, 16  ;;  %s585_s23 = int_to_ptr.vmem [resolvable:$true] %s584_s23 }
  0x29   : > { %p3807_p13 = scmp.ne.s32.totalorder %s544_s26, %s3806_s29  ;;  %p3808_p0 = pneg %p4117_p12 }
  0x2a   : > { %p3814_p3 = scmp.lt.s32.totalorder %s544_s26, %s544_s26  ;;  %p3815_p4 = scmp.lt.s32.totalorder %s3806_s29, %s3806_s29 }
  0x2b   : > { %p3809_p1 = pnand %p3808_p0, %p3807_p13 }
  0x2c   : > { %p3816_p7 = por %p3815_p4, %p3814_p3 }
  0x2d   : > { %p3810_p2 = pneg %p3809_p1 }
  0x2f   : > { %p3817_p8 = pnand %p3816_p7, %p3810_p2 }
  0x31   : > { %3820 = shalt.err (!%p3817_p8)
}
  0x32   : > { %s3940_s28 = smov [#allocation2]   ;;  %s3821_s0 = scalar_lea.vmem %s585_s23, 16 }
  0x33   : > { %3681 = dma.vmem_to_smem (!%p4117_p12), %s544_s26, 16, %s3940_s28, [#allocation4]  }
  0x34   : > { %p3822_p11 = scmp.ne.s32.totalorder %s585_s23, %s3821_s0  ;;  %p3829_p5 = scmp.lt.s32.totalorder %s585_s23, %s585_s23 }
  0x35   : > { %p3830_p10 = scmp.lt.s32.totalorder %s3821_s0, %s3821_s0 }
  0x36   : > { %p3824_p9 = pnand %p3822_p11, %p3808_p0 }
  0x37   : > { %p3831_p13 = por %p3830_p10, %p3829_p5 }
  0x38   : > { %p3825_p6 = pneg %p3824_p9 }
  0x3a   : > { %p3832_p1 = pnand %p3831_p13, %p3825_p6 }
  0x3c   : > { %3835 = shalt.err (!%p3832_p1)
}
  0x3d   : > { %s3941_s21 = smov [#allocation5]   ;;  %p5555_p2 = scmp.ne.s32.totalorder %s5551_s30, 0 }
  0x3e   : > { %3684 = dma.vmem_to_smem (!%p4117_p12), %s585_s23, 16, %s3941_s21, [#allocation6]  }
  0x3f   : > { %619 = sbr.rel (%p5555_p2) target bundleno = 3878 (0xf26), region = 80 }
  0x46   : > { %p5556_p3 = scmp.eq.s32.totalorder %s4075_s2, 0 }
  0x48   : > { %3909 = dma.done.wait (%p5556_p3), [#allocation4], 16   ;;  %p5557_p4 = pmov %p5556_p3 }
  0x49   : > { %p5558_p9 = pmov %p5556_p3 }
  0x4a   : > { %3911 = vsyncadd (%p5557_p4), [#allocation4], 4294967280 }
  0x4b   : > { %3913 = dma.done.wait (%p5558_p9), [#allocation6], 16   ;;  %p5559_p5 = pmov %p5556_p3 }
  0x4d   : > { %3915 = vsyncadd (%p5559_p5), [#allocation6], 4294967280 }
  0x4e   : > { %629 = sfence }
  0x4f   : > { %s5560_s3 = sld [smem:[#allocation30_spill]]  ;;  %v3942_v2 = vmov 0   ;;  %p709_p6 = scmp.lt.s32.totalorder %s4075_s2, 1  ;;  %v807_v57 = vlaneseq  ;;  %vm1812_vm0 = vcmask 523264   ;;  %vm3944_vm1 = vmmov 0  }
  0x50   : > { %929 = vmatprep.mubr.bf16.mxu0 %v3942_v2  ;;  %s5561_s6 = sld [smem:[#allocation32_spill]]  ;;  %s5562_s18 = sld [smem:[#allocation27_spill]]  ;;  %vm2079_vm2 = vcmask 261120   ;;  %vm2229_vm6 = vcmask 1040384   ;;  %vm2328_vm9 = vcmask 253952  }
  0x51   : > { %s4173_s30 = scalar_select %p709_p6, %s4075_s2, 1  ;;  %v4319_v58 = vshrl.u32 %v807_v57, 7  ;;  %vm4572_vm3 = vmpackc.low %vm2079_vm2, %vm2079_vm2 }
  0x52   : > { %s5569_s5 = sld [smem:[#allocation31_spill]]  ;;  %s5571_s8 = sld [smem:[#allocation34_spill]] }
  0x53   : > { %s4191_s26 = sshll.u32 %s4173_s30, 7  ;;  %v4322_v59 = vsub.s32 0, %v4319_v58  ;;  %v813_v61 = vsub.s32 1, %v4319_v58  ;;  %s5572_s7 = sld [smem:[#allocation33_spill]] }
  0x54   : > { %s2201_s23 = sld [smem:[#allocation5]]  ;;  %s5575_s1 = sld [smem:[#allocation29_spill]] }
  0x55   : > { %v3736_v0 = vld [vmem:[%s5560_s3 + $0x4] ss:$8 sps:$4 sm:$0xff]   ;;  %v3738_v1 = vld [vmem:[%s5560_s3] ss:$8 sps:$4 sm:$0xff]   ;;  %v3739_v3 = vld [vmem:[%s5560_s3 + $0x14] ss:$8 sps:$4 sm:$0xff]  }
  0x56   : > { %897 = vmatprep.subr.bf16.mxu0 %v3736_v0  ;;  %v3741_v4 = vld [vmem:[%s5560_s3 + $0x10] ss:$8 sps:$4 sm:$0xff]   ;;  %v3742_v5 = vld [vmem:[%s5560_s3 + $0x24] ss:$8 sps:$4 sm:$0xff]   ;;  %v3744_v6 = vld [vmem:[%s5560_s3 + $0x20] ss:$8 sps:$4 sm:$0xff]   ;;  %s4209_s19 = scalar_lea.vmem %s5562_s18, %s4191_s26 }
  0x57   : > { %898 = vmatpush1.bf16.msra.mxu0 %v3738_v1  ;;  %v3745_v7 = vld [vmem:[%s5560_s3 + $0x34] ss:$8 sps:$4 sm:$0xff]   ;;  %v3747_v8 = vld [vmem:[%s5560_s3 + $0x30] ss:$8 sps:$4 sm:$0xff]   ;;  %v3748_v9 = vld [vmem:[%s5560_s3 + $0x44] ss:$8 sps:$4 sm:$0xff]  }
  0x58   : > { %899 = vmatprep.subr.bf16.mxu0 %v3739_v3  ;;  %v3750_v10 = vld [vmem:[%s5560_s3 + $0x40] ss:$8 sps:$4 sm:$0xff]   ;;  %v3751_v11 = vld [vmem:[%s5560_s3 + $0x54] ss:$8 sps:$4 sm:$0xff]   ;;  %v3753_v13 = vld [vmem:[%s5560_s3 + $0x50] ss:$8 sps:$4 sm:$0xff]  }
  0x59   : > { %v3760_v12 = vld [vmem:[%s5561_s6 + $0x40] sm:$0xff]   ;;  %v3762_v16 = vld [vmem:[%s5561_s6 + $0x48] sm:$0xff]   ;;  %v3764_v18 = vld [vmem:[%s5561_s6 + $0x50] sm:$0xff]   ;;  %s5570_s18 = sld [smem:[#allocation28_spill]]  ;;  %s4644_s21 = sand.u32 1, %s3930_s22  }
  0x5a   : > { %v3761_v14 = vld [vmem:[%s5561_s6] sm:$0xff]   ;;  %3134 = vmatprep.subr.bf16.mxu1 %v3760_v12  ;;  %v3763_v17 = vld [vmem:[%s5561_s6 + $0x8] sm:$0xff]   ;;  %v3757_v20 = vld [vmem:[%s5560_s3 + $0x74] ss:$8 sps:$4 sm:$0xff]   ;;  %s721_s0 = scalar_lea.vmem %s5575_s1, %s4173_s30  ;;  %s678_s29 = scalar_lea.vmem [#allocation7], %s4644_s21 }
  0x5b   : > { %900 = vmatpush1.bf16.msra.mxu0 %v3741_v4  ;;  %v3754_v15 = vld [vmem:[%s5560_s3 + $0x64] ss:$8 sps:$4 sm:$0xff]   ;;  %3135 = vmatpush3.bf16.msra.mxu1 %v3761_v14  ;;  %v3756_v19 = vld [vmem:[%s5560_s3 + $0x60] ss:$8 sps:$4 sm:$0xff]   ;;  %v3765_v21 = vld [vmem:[%s5561_s6 + $0x10] sm:$0xff]   ;;  %s3121_s14 = sld [smem:[#allocation5 + $0x1]] }
  0x5c   : > { %901 = vmatprep.subr.bf16.mxu0 %v3742_v5  ;;  %3136 = vmatprep.subr.bf16.mxu1 %v3762_v16  ;;  %v3766_v22 = vld [vmem:[%s5561_s6 + $0x58] sm:$0xff]   ;;  %v739_v24 = vld [vmem:[%s4209_s19] sm:$0xff]  ;;  %v740_v25 = vld [vmem:[%s4209_s19 + $0x8] sm:$0xff]  ;;  %s5524_s27 = sshll.u32 %s4075_s2, 4  ;;  %s2762_s25 = scalar_lea.sflag [#allocation3], %s4644_s21 }
  0x5d   : > { %v3759_v23 = vld [vmem:[%s5560_s3 + $0x70] ss:$8 sps:$4 sm:$0xff]   ;;  %v3768_v27 = vld [vmem:[%s5561_s6 + $0x60] sm:$0xff]   ;;  %v4231_v29 = vpack.c.bf16 %v740_v25, %v739_v24  ;;  %v744_v34 = vld [vmem:[%s4209_s19 + $0x28] sm:$0xff]  ;;  %p5576_p12 = scmp.ne.s32.totalorder %s5548_s4, 0 }
  0x5e   : > { %v3767_v26 = vld [vmem:[%s5561_s6 + $0x18] sm:$0xff]   ;;  %v3769_v28 = vld [vmem:[%s5561_s6 + $0x20] sm:$0xff]   ;;  %v741_v30 = vld [vmem:[%s4209_s19 + $0x10] sm:$0xff] }
  0x5f   : > { %902 = vmatpush1.bf16.msra.mxu0 %v3744_v6  ;;  %3137 = vmatpush3.bf16.msra.mxu1 %v3763_v17  ;;  %v742_v31 = vld [vmem:[%s4209_s19 + $0x18] sm:$0xff]  ;;  %v743_v33 = vld [vmem:[%s4209_s19 + $0x20] sm:$0xff]  ;;  %v745_v36 = vld [vmem:[%s4209_s19 + $0x30] sm:$0xff]  ;;  %s4369_s24 = scalar_lea.vmem %s5570_s18, %s4191_s26  ;;  %s2794_s18 = sshll.u32 %s678_s29, 4  ;;  %s2795_s18 = int_to_ptr.vmem [resolvable:$true] %s2794_s18 }
  0x60   : > { %903 = vmatprep.subr.bf16.mxu0 %v3745_v7  ;;  %3138 = vmatprep.subr.bf16.mxu1 %v3764_v18  ;;  %v4237_v32 = vpack.c.bf16 %v742_v31, %v741_v30  ;;  %v4243_v35 = vpack.c.bf16 %v744_v34, %v743_v33  ;;  %v746_v37 = vld [vmem:[%s4209_s19 + $0x38] sm:$0xff]  ;;  %v4254_v39 = vld [vmem:[%s4209_s19 + $0x40] sm:$0xff]  ;;  %v4257_v40 = vld [vmem:[%s4209_s19 + $0x48] sm:$0xff] }
  0x61   : > { %v4249_v38 = vpack.c.bf16 %v746_v37, %v745_v36  ;;  %v4261_v41 = vpack.c.bf16 %v4257_v40, %v4254_v39  ;;  %v4266_v42 = vld [vmem:[%s4209_s19 + $0x50] sm:$0xff]  ;;  %v4269_v43 = vld [vmem:[%s4209_s19 + $0x58] sm:$0xff]  ;;  %v4278_v45 = vld [vmem:[%s4209_s19 + $0x60] sm:$0xff] }
  0x62   : > { %5563 = vst [vmem:[#allocation20_spill] sm:$0xff] %v4266_v42  ;;  %5564 = vst [vmem:[#allocation21_spill] sm:$0xff] %v4269_v43  ;;  %v4273_v44 = vpack.c.bf16 %v4269_v43, %v4266_v42  ;;  %v4281_v46 = vld [vmem:[%s4209_s19 + $0x68] sm:$0xff]  ;;  %v4290_v48 = vld [vmem:[%s4209_s19 + $0x70] sm:$0xff] }
  0x63   : > { %904 = vmatpush1.bf16.msra.mxu0 %v3747_v8  ;;  %3139 = vmatpush3.bf16.msra.mxu1 %v3765_v21  ;;  %5565 = vst [vmem:[#allocation22_spill] sm:$0xff] %v4278_v45  ;;  %5566 = vst [vmem:[#allocation23_spill] sm:$0xff] %v4281_v46  ;;  %v4285_v47 = vpack.c.bf16 %v4281_v46, %v4278_v45  ;;  %v4293_v49 = vld [vmem:[%s4209_s19 + $0x78] sm:$0xff]  ;;  %v3770_v51 = vld [vmem:[%s5561_s6 + $0x68] sm:$0xff]  }
  0x64   : > { %905 = vmatprep.subr.bf16.mxu0 %v3748_v9  ;;  %3140 = vmatprep.subr.bf16.mxu1 %v3766_v22  ;;  %5567 = vst [vmem:[#allocation24_spill] sm:$0xff] %v4290_v48  ;;  %5568 = vst [vmem:[#allocation25_spill] sm:$0xff] %v4293_v49  ;;  %v4297_v50 = vpack.c.bf16 %v4293_v49, %v4290_v48  ;;  %v3771_v52 = vld [vmem:[%s5561_s6 + $0x28] sm:$0xff]   ;;  %v3772_v53 = vld [vmem:[%s5561_s6 + $0x70] sm:$0xff]  }
  0x65   : > { %v3773_v54 = vld [vmem:[%s5561_s6 + $0x30] sm:$0xff]   ;;  %v3774_v55 = vld [vmem:[%s5561_s6 + $0x78] sm:$0xff]   ;;  %v805_v60 = vld [vmem:[%s5569_s5] sm:$0x3] }
  0x66   : > { %v3775_v56 = vld [vmem:[%s5561_s6 + $0x38] sm:$0xff]   ;;  %v4329_v62 = vrot.slane %v805_v60, %v4322_v59  ;;  %v4331_v63 = vrot.slane %v805_v60, %v813_v61 }
  0x67   : > { %906 = vmatpush1.bf16.msra.mxu0 %v3750_v10  ;;  %3141 = vmatpush3.bf16.msra.mxu1 %v3767_v26 }
  0x68   : > { %907 = vmatprep.subr.bf16.mxu0 %v3751_v11  ;;  %3142 = vmatprep.subr.bf16.mxu1 %v3768_v27 }
  0x6b   : > { %908 = vmatpush1.bf16.msra.mxu0 %v3753_v13  ;;  %3143 = vmatpush3.bf16.msra.mxu1 %v3769_v28 }
  0x6c   : > { %909 = vmatprep.subr.bf16.mxu0 %v3754_v15  ;;  %3144 = vmatprep.subr.bf16.mxu1 %v3770_v51 }
  0x6f   : > { %910 = vmatpush1.bf16.msra.mxu0 %v3756_v19  ;;  %3145 = vmatpush3.bf16.msra.mxu1 %v3771_v52 }
  0x70   : > { %911 = vmatprep.subr.bf16.mxu0 %v3757_v20  ;;  %3146 = vmatprep.subr.bf16.mxu1 %v3772_v53 }
  0x73   : > { %912 = vmatpush1.bf16.msra.mxu0 %v3759_v23  ;;  %3147 = vmatpush3.bf16.msra.mxu1 %v3773_v54 }
  0x74   : > { %3148 = vmatprep.subr.bf16.mxu1 %v3774_v55 }
  0x76   : > { %930 = vmatmul.mubr.bf16.vlgmr.msra.gmra.mrb[0].mxu0 %v4231_v29 }
  0x77   : > { %939 = vmatprep.mubr.bf16.mxu0 %v3942_v2  ;;  %3149 = vmatpush3.bf16.msra.mxu1 %v3775_v56 }
  0x7e   : > { %940 = vmatmul.mubr.bf16.gmra.mrb[4].mxu0 %v4237_v32 }
  0x7f   : > { %949 = vmatprep.mubr.bf16.mxu0 %v3942_v2 }
  0x86   : > { %950 = vmatmul.mubr.bf16.gmra.mrb[8].mxu0 %v4243_v35 }
  0x87   : > { %959 = vmatprep.mubr.bf16.mxu0 %v3942_v2 }
  0x8e   : > { %960 = vmatmul.mubr.bf16.gmra.mrb[12].mxu0 %v4249_v38 }
  0x8f   : > { %969 = vmatprep.mubr.bf16.mxu0 %v3942_v2 }
  0x96   : > { %970 = vmatmul.mubr.bf16.gmra.mrb[16].mxu0 %v4261_v41 }
  0x97   : > { %979 = vmatprep.mubr.bf16.mxu0 %v3942_v2 }
  0x9e   : > { %980 = vmatmul.mubr.bf16.gmra.mrb[20].mxu0 %v4273_v44 }
  0x9f   : > { %989 = vmatprep.mubr.bf16.mxu0 %v3942_v2 }
  0xa6   : > { %990 = vmatmul.mubr.bf16.gmra.mrb[24].mxu0 %v4285_v47 }
  0xa7   : > { %999 = vmatprep.mubr.bf16.mxu0 %v3942_v2 }
  0xae   : > { %1000 = vmatmul.mubr.bf16.gmra.mrb[28].mxu0 %v4297_v50 }
 0x149   : > { %v931_v0 = vpop.f32.mrb[0].mxu0 }
 0x14a   : > { %v932_v1 = vadd.f32 %v931_v0, %v4329_v62  ;;  %v933_v3 = vpop.f32.mrb[1].mxu0 }
 0x14b   : > { %v934_v4 = vadd.f32 %v933_v3, %v4331_v63  ;;  %v935_v5 = vpop.f32.mrb[2].mxu0 }
 0x14c   : > { %v1010_v6 = vmax.f32 %v932_v1, 0.0  ;;  %v936_v7 = vadd.f32 %v935_v5, %v4329_v62  ;;  %v937_v8 = vpop.f32.mrb[3].mxu0 }
 0x14d   : > { %v1011_v9 = vmax.f32 %v934_v4, 0.0  ;;  %v938_v10 = vadd.f32 %v937_v8, %v4331_v63 }
 0x14e   : > { %v1012_v11 = vmax.f32 %v936_v7, 0.0  ;;  %v1042_v13 = vmin.f32 %v1010_v6, 6.0 }
 0x14f   : > { %v1013_v12 = vmax.f32 %v938_v10, 0.0  ;;  %v1043_v15 = vmin.f32 %v1011_v9, 6.0 }
 0x150   : > { %v1044_v14 = vmin.f32 %v1012_v11, 6.0 }
 0x151   : > { %v1045_v16 = vmin.f32 %v1013_v12, 6.0  ;;  %v941_v17 = vpop.f32.mrb[4].mxu0 }
 0x152   : > { %v1074_v18 = vpack.c.bf16 %v1044_v14, %v1042_v13  ;;  %v942_v19 = vadd.f32 %v941_v17, %v4329_v62  ;;  %v943_v20 = vpop.f32.mrb[5].mxu0 }
 0x153   : > { %v944_v21 = vadd.f32 %v943_v20, %v4331_v63  ;;  %v945_v22 = vpop.f32.mrb[6].mxu0  ;;  %v1075_v23 = vpack.c.bf16 %v1045_v16, %v1043_v15 }
 0x154   : > { %v1014_v24 = vmax.f32 %v942_v19, 0.0  ;;  %v946_v25 = vadd.f32 %v945_v22, %v4329_v62  ;;  %v947_v26 = vpop.f32.mrb[7].mxu0 }
 0x155   : > { %v1015_v27 = vmax.f32 %v944_v21, 0.0  ;;  %v948_v28 = vadd.f32 %v947_v26, %v4331_v63  ;;  %1250 = vmatprep.mubr.bf16.mxu1 %v1075_v23 }
 0x156   : > { %v1016_v30 = vmax.f32 %v946_v25, 0.0  ;;  %1251 = vmatmul.mubr.bf16.vlgmr.msra.gmra.mrb[0].mxu1 %v1074_v18  ;;  %v1046_v33 = vmin.f32 %v1014_v24, 6.0 }
 0x157   : > { %v1017_v31 = vmax.f32 %v948_v28, 0.0  ;;  %v1047_v36 = vmin.f32 %v1015_v27, 6.0 }
 0x158   : > { %v1048_v34 = vmin.f32 %v1016_v30, 6.0 }
 0x159   : > { %v1049_v37 = vmin.f32 %v1017_v31, 6.0  ;;  %v951_v51 = vpop.f32.mrb[8].mxu0 }
 0x15a   : > { %v1076_v52 = vpack.c.bf16 %v1048_v34, %v1046_v33  ;;  %v952_v53 = vadd.f32 %v951_v51, %v4329_v62  ;;  %v953_v54 = vpop.f32.mrb[9].mxu0 }
 0x15b   : > { %v1077_v55 = vpack.c.bf16 %v1049_v37, %v1047_v36  ;;  %v954_v56 = vadd.f32 %v953_v54, %v4331_v63  ;;  %v955_v60 = vpop.f32.mrb[10].mxu0 }
 0x15c   : > { %v1018_v61 = vmax.f32 %v952_v53, 0.0  ;;  %v956_v0 = vadd.f32 %v955_v60, %v4329_v62  ;;  %v957_v1 = vpop.f32.mrb[11].mxu0 }
 0x15d   : > { %v1019_v3 = vmax.f32 %v954_v56, 0.0  ;;  %v958_v4 = vadd.f32 %v957_v1, %v4331_v63  ;;  %1258 = vmatprep.mubr.bf16.mxu1 %v1077_v55 }
 0x15e   : > { %v1020_v5 = vmax.f32 %v956_v0, 0.0  ;;  %1259 = vmatmul.mubr.bf16.gmra.mrb[4].mxu1 %v1076_v52  ;;  %v1050_v7 = vmin.f32 %v1018_v61, 6.0 }
 0x15f   : > { %v1021_v6 = vmax.f32 %v958_v4, 0.0  ;;  %v1051_v9 = vmin.f32 %v1019_v3, 6.0 }
 0x160   : > { %v1052_v8 = vmin.f32 %v1020_v5, 6.0 }
 0x161   : > { %v1053_v10 = vmin.f32 %v1021_v6, 6.0  ;;  %v961_v11 = vpop.f32.mrb[12].mxu0 }
 0x162   : > { %v1078_v12 = vpack.c.bf16 %v1052_v8, %v1050_v7  ;;  %v962_v13 = vadd.f32 %v961_v11, %v4329_v62  ;;  %v963_v14 = vpop.f32.mrb[13].mxu0 }
 0x163   : > { %v1079_v15 = vpack.c.bf16 %v1053_v10, %v1051_v9  ;;  %v964_v16 = vadd.f32 %v963_v14, %v4331_v63  ;;  %v965_v17 = vpop.f32.mrb[14].mxu0 }
 0x164   : > { %v1022_v18 = vmax.f32 %v962_v13, 0.0  ;;  %v966_v19 = vadd.f32 %v965_v17, %v4329_v62  ;;  %v967_v20 = vpop.f32.mrb[15].mxu0 }
 0x165   : > { %v1023_v21 = vmax.f32 %v964_v16, 0.0  ;;  %v968_v22 = vadd.f32 %v967_v20, %v4331_v63  ;;  %1266 = vmatprep.mubr.bf16.mxu1 %v1079_v15 }
 0x166   : > { %v1024_v23 = vmax.f32 %v966_v19, 0.0  ;;  %1267 = vmatmul.mubr.bf16.gmra.mrb[8].mxu1 %v1078_v12  ;;  %v1054_v25 = vmin.f32 %v1022_v18, 6.0 }
 0x167   : > { %v1025_v24 = vmax.f32 %v968_v22, 0.0  ;;  %v1055_v27 = vmin.f32 %v1023_v21, 6.0 }
 0x168   : > { %v1056_v26 = vmin.f32 %v1024_v23, 6.0 }
 0x169   : > { %v1057_v28 = vmin.f32 %v1025_v24, 6.0  ;;  %v971_v30 = vpop.f32.mrb[16].mxu0 }
 0x16a   : > { %v1080_v31 = vpack.c.bf16 %v1056_v26, %v1054_v25  ;;  %v972_v33 = vadd.f32 %v971_v30, %v4329_v62  ;;  %v973_v34 = vpop.f32.mrb[17].mxu0 }
 0x16b   : > { %v1081_v36 = vpack.c.bf16 %v1057_v28, %v1055_v27  ;;  %v974_v37 = vadd.f32 %v973_v34, %v4331_v63  ;;  %v975_v51 = vpop.f32.mrb[18].mxu0 }
 0x16c   : > { %v1026_v52 = vmax.f32 %v972_v33, 0.0  ;;  %v976_v53 = vadd.f32 %v975_v51, %v4329_v62  ;;  %v977_v54 = vpop.f32.mrb[19].mxu0 }
 0x16d   : > { %v1027_v55 = vmax.f32 %v974_v37, 0.0  ;;  %v978_v56 = vadd.f32 %v977_v54, %v4331_v63  ;;  %1274 = vmatprep.mubr.bf16.mxu1 %v1081_v36 }
 0x16e   : > { %v1028_v60 = vmax.f32 %v976_v53, 0.0  ;;  %1275 = vmatmul.mubr.bf16.gmra.mrb[12].mxu1 %v1080_v31  ;;  %v1058_v0 = vmin.f32 %v1026_v52, 6.0 }
 0x16f   : > { %v1029_v61 = vmax.f32 %v978_v56, 0.0  ;;  %v1059_v3 = vmin.f32 %v1027_v55, 6.0 }
 0x170   : > { %v1060_v1 = vmin.f32 %v1028_v60, 6.0 }
 0x171   : > { %v1061_v4 = vmin.f32 %v1029_v61, 6.0  ;;  %v981_v5 = vpop.f32.mrb[20].mxu0 }
 0x172   : > { %v1082_v6 = vpack.c.bf16 %v1060_v1, %v1058_v0  ;;  %v982_v7 = vadd.f32 %v981_v5, %v4329_v62  ;;  %v983_v8 = vpop.f32.mrb[21].mxu0 }
 0x173   : > { %v1083_v9 = vpack.c.bf16 %v1061_v4, %v1059_v3  ;;  %v984_v10 = vadd.f32 %v983_v8, %v4331_v63  ;;  %v985_v11 = vpop.f32.mrb[22].mxu0 }
 0x174   : > { %v1030_v12 = vmax.f32 %v982_v7, 0.0  ;;  %v986_v13 = vadd.f32 %v985_v11, %v4329_v62  ;;  %v987_v14 = vpop.f32.mrb[23].mxu0 }
 0x175   : > { %v1031_v15 = vmax.f32 %v984_v10, 0.0  ;;  %v988_v16 = vadd.f32 %v987_v14, %v4331_v63  ;;  %1282 = vmatprep.mubr.bf16.mxu1 %v1083_v9 }
 0x176   : > { %v1032_v17 = vmax.f32 %v986_v13, 0.0  ;;  %1283 = vmatmul.mubr.bf16.gmra.mrb[16].mxu1 %v1082_v6  ;;  %v1062_v19 = vmin.f32 %v1030_v12, 6.0 }
 0x177   : > { %v1033_v18 = vmax.f32 %v988_v16, 0.0  ;;  %v1063_v21 = vmin.f32 %v1031_v15, 6.0 }
 0x178   : > { %v1064_v20 = vmin.f32 %v1032_v17, 6.0 }
 0x179   : > { %v1065_v22 = vmin.f32 %v1033_v18, 6.0  ;;  %v991_v23 = vpop.f32.mrb[24].mxu0 }
 0x17a   : > { %v1084_v24 = vpack.c.bf16 %v1064_v20, %v1062_v19  ;;  %v992_v25 = vadd.f32 %v991_v23, %v4329_v62  ;;  %v993_v26 = vpop.f32.mrb[25].mxu0  ;;  %v3776_v20 = vld [vmem:[%s5571_s8] sm:$0xff]   ;;  %v3779_v23 = vld [vmem:[%s5571_s8 + $0x18] sm:$0xff]  }
 0x17b   : > { %v1085_v27 = vpack.c.bf16 %v1065_v22, %v1063_v21  ;;  %v994_v28 = vadd.f32 %v993_v26, %v4331_v63  ;;  %v995_v30 = vpop.f32.mrb[26].mxu0  ;;  %v3777_v21 = vld [vmem:[%s5571_s8 + $0x8] sm:$0xff]   ;;  %3357 = vmatprep.subr.bf16.mxu1 %v3776_v20  ;;  %v3778_v22 = vld [vmem:[%s5571_s8 + $0x10] sm:$0xff]  }
 0x17c   : > { %v1034_v31 = vmax.f32 %v992_v25, 0.0  ;;  %v996_v33 = vadd.f32 %v995_v30, %v4329_v62  ;;  %v997_v34 = vpop.f32.mrb[27].mxu0  ;;  %3358 = vmatpush3.bf16.msra.mxu1 %v3776_v20  ;;  %v3781_v25 = vld [vmem:[%s5571_s8 + $0x28] sm:$0xff]  }
 0x17d   : > { %v1035_v36 = vmax.f32 %v994_v28, 0.0  ;;  %v998_v37 = vadd.f32 %v997_v34, %v4331_v63  ;;  %1290 = vmatprep.mubr.bf16.mxu1 %v1085_v27  ;;  %3359 = vmatprep.subr.bf16.mxu1 %v3777_v21 }
 0x17e   : > { %v1036_v51 = vmax.f32 %v996_v33, 0.0  ;;  %1291 = vmatmul.mubr.bf16.gmra.mrb[20].mxu1 %v1084_v24  ;;  %v1066_v53 = vmin.f32 %v1034_v31, 6.0  ;;  %v3780_v24 = vld [vmem:[%s5571_s8 + $0x20] sm:$0xff]  }
 0x17f   : > { %v1037_v52 = vmax.f32 %v998_v37, 0.0  ;;  %v1067_v55 = vmin.f32 %v1035_v36, 6.0 }
 0x180   : > { %v1068_v54 = vmin.f32 %v1036_v51, 6.0  ;;  %3360 = vmatpush3.bf16.msra.mxu1 %v3777_v21 }
 0x181   : > { %v1069_v56 = vmin.f32 %v1037_v52, 6.0  ;;  %v1001_v60 = vpop.f32.mrb[28].mxu0  ;;  %3361 = vmatprep.subr.bf16.mxu1 %v3778_v22 }
 0x182   : > { %v1086_v61 = vpack.c.bf16 %v1068_v54, %v1066_v53  ;;  %v1002_v0 = vadd.f32 %v1001_v60, %v4329_v62  ;;  %v1003_v1 = vpop.f32.mrb[29].mxu0 }
 0x183   : > { %v1087_v3 = vpack.c.bf16 %v1069_v56, %v1067_v55  ;;  %v1004_v4 = vadd.f32 %v1003_v1, %v4331_v63  ;;  %v1005_v5 = vpop.f32.mrb[30].mxu0 }
 0x184   : > { %v1038_v6 = vmax.f32 %v1002_v0, 0.0  ;;  %v1006_v7 = vadd.f32 %v1005_v5, %v4329_v62  ;;  %v1007_v8 = vpop.f32.mrb[31].mxu0  ;;  %v755_v62 = vld [vmem:[%s4369_s24] sm:$0xff]  ;;  %3362 = vmatpush3.bf16.msra.mxu1 %v3778_v22 }
 0x185   : > { %v1039_v9 = vmax.f32 %v1004_v4, 0.0  ;;  %v1008_v10 = vadd.f32 %v1007_v8, %v4331_v63  ;;  %1298 = vmatprep.mubr.bf16.mxu1 %v1087_v3  ;;  %v756_v63 = vld [vmem:[%s4369_s24 + $0x8] sm:$0xff]  ;;  %3363 = vmatprep.subr.bf16.mxu1 %v3779_v23 }
 0x186   : > { %v1040_v11 = vmax.f32 %v1006_v7, 0.0  ;;  %1299 = vmatmul.mubr.bf16.gmra.mrb[24].mxu1 %v1086_v61  ;;  %v1070_v13 = vmin.f32 %v1038_v6, 6.0  ;;  %v4373_v19 = vpack.c.bf16 %v756_v63, %v755_v62 }
 0x187   : > { %v1041_v12 = vmax.f32 %v1008_v10, 0.0  ;;  %v1071_v15 = vmin.f32 %v1039_v9, 6.0 }
 0x188   : > { %v1072_v14 = vmin.f32 %v1040_v11, 6.0  ;;  %3341 = vmatprep.mubr.bf16.mxu0 %v4373_v19  ;;  %3364 = vmatpush3.bf16.msra.mxu1 %v3779_v23 }
 0x189   : > { %v1073_v16 = vmin.f32 %v1041_v12, 6.0  ;;  %3365 = vmatprep.subr.bf16.mxu1 %v3780_v24 }
 0x18a   : > { %v1088_v17 = vpack.c.bf16 %v1072_v14, %v1070_v13 }
 0x18b   : > { %v1089_v18 = vpack.c.bf16 %v1073_v16, %v1071_v15 }
 0x18c   : > { %3366 = vmatpush3.bf16.msra.mxu1 %v3780_v24 }
 0x18d   : > { %1306 = vmatprep.mubr.bf16.mxu1 %v1089_v18  ;;  %3367 = vmatprep.subr.bf16.mxu1 %v3781_v25 }
 0x18e   : > { %1307 = vmatmul.mubr.bf16.gmra.mrb[28].mxu1 %v1088_v17 }
 0x190   : > { %3368 = vmatpush3.bf16.msra.mxu1 %v3781_v25 }
 0x229   : > { %v3150_v26 = vpop.f32.mrb[0].mxu1 }
 0x22a   : > { %v3151_v27 = vpop.f32.mrb[1].mxu1 }
 0x22b   : > { %v3152_v28 = vadd.f32 %v3151_v27, %v3150_v26  ;;  %v3153_v30 = vpop.f32.mrb[2].mxu1 }
 0x22c   : > { %v3154_v31 = vpop.f32.mrb[3].mxu1 }
 0x22d   : > { %v3155_v33 = vadd.f32 %v3154_v31, %v3153_v30 }
 0x22f   : > { %v1315_v34 = vpack.c.bf16 %v3155_v33, %v3152_v28 }
 0x231   : > { %v3156_v36 = vpop.f32.mrb[4].mxu1  ;;  %3325 = vmatprep.subr.bf16.mxu0 %v1315_v34 }
 0x232   : > { %v3157_v37 = vpop.f32.mrb[5].mxu1  ;;  %3326 = vmatpush3.bf16.msra.mxu0 %v1315_v34 }
 0x233   : > { %v3158_v51 = vadd.f32 %v3157_v37, %v3156_v36  ;;  %v3159_v52 = vpop.f32.mrb[6].mxu1 }
 0x234   : > { %v3160_v53 = vpop.f32.mrb[7].mxu1 }
 0x235   : > { %v3161_v54 = vadd.f32 %v3160_v53, %v3159_v52 }
 0x237   : > { %v1316_v55 = vpack.c.bf16 %v3161_v54, %v3158_v51  ;;  %v4395_v54 = vld [vmem:[%s4369_s24 + $0x10] sm:$0xff] }
 0x239   : > { %v3162_v56 = vpop.f32.mrb[8].mxu1  ;;  %3327 = vmatprep.subr.bf16.mxu0 %v1316_v55 }
 0x23a   : > { %v3163_v60 = vpop.f32.mrb[9].mxu1  ;;  %3328 = vmatpush3.bf16.msra.mxu0 %v1316_v55  ;;  %v4398_v55 = vld [vmem:[%s4369_s24 + $0x18] sm:$0xff] }
 0x23b   : > { %v3164_v61 = vadd.f32 %v3163_v60, %v3162_v56  ;;  %v3165_v0 = vpop.f32.mrb[10].mxu1  ;;  %v4401_v60 = vld [vmem:[%s4369_s24 + $0x20] sm:$0xff] }
 0x23c   : > { %v3166_v1 = vpop.f32.mrb[11].mxu1 }
 0x23d   : > { %v3167_v3 = vadd.f32 %v3166_v1, %v3165_v0  ;;  %v4408_v0 = vpack.c.bf16 %v4398_v55, %v4395_v54 }
 0x23f   : > { %v1317_v4 = vpack.c.bf16 %v3167_v3, %v3164_v61  ;;  %v4404_v61 = vld [vmem:[%s4369_s24 + $0x28] sm:$0xff]  ;;  %v4417_v3 = vld [vmem:[%s4369_s24 + $0x30] sm:$0xff] }
 0x240   : > { %v4412_v1 = vpack.c.bf16 %v4404_v61, %v4401_v60 }
 0x241   : > { %v3168_v5 = vpop.f32.mrb[12].mxu1  ;;  %3329 = vmatprep.subr.bf16.mxu0 %v1317_v4 }
 0x242   : > { %v3169_v6 = vpop.f32.mrb[13].mxu1  ;;  %3330 = vmatpush3.bf16.msra.mxu0 %v1317_v4  ;;  %v4420_v4 = vld [vmem:[%s4369_s24 + $0x38] sm:$0xff] }
 0x243   : > { %v3170_v7 = vadd.f32 %v3169_v6, %v3168_v5  ;;  %v3171_v8 = vpop.f32.mrb[14].mxu1  ;;  %v4423_v5 = vld [vmem:[%s4369_s24 + $0x40] sm:$0xff]  ;;  %v4426_v6 = vld [vmem:[%s4369_s24 + $0x48] sm:$0xff] }
 0x244   : > { %v3172_v9 = vpop.f32.mrb[15].mxu1 }
 0x245   : > { %v3173_v10 = vadd.f32 %v3172_v9, %v3171_v8  ;;  %v4434_v8 = vpack.c.bf16 %v4426_v6, %v4423_v5  ;;  %v4439_v9 = vld [vmem:[%s4369_s24 + $0x50] sm:$0xff] }
 0x247   : > { %v1318_v11 = vpack.c.bf16 %v3173_v10, %v3170_v7  ;;  %v4430_v7 = vpack.c.bf16 %v4420_v4, %v4417_v3  ;;  %v4442_v10 = vld [vmem:[%s4369_s24 + $0x58] sm:$0xff] }
 0x249   : > { %v3174_v12 = vpop.f32.mrb[16].mxu1  ;;  %3331 = vmatprep.subr.bf16.mxu0 %v1318_v11 }
 0x24a   : > { %v3175_v13 = vpop.f32.mrb[17].mxu1  ;;  %3332 = vmatpush3.bf16.msra.mxu0 %v1318_v11  ;;  %v4445_v11 = vld [vmem:[%s4369_s24 + $0x60] sm:$0xff] }
 0x24b   : > { %v3176_v14 = vadd.f32 %v3175_v13, %v3174_v12  ;;  %v3177_v15 = vpop.f32.mrb[18].mxu1  ;;  %v4448_v12 = vld [vmem:[%s4369_s24 + $0x68] sm:$0xff]  ;;  %v4452_v13 = vpack.c.bf16 %v4442_v10, %v4439_v9 }
 0x24c   : > { %v3178_v16 = vpop.f32.mrb[19].mxu1 }
 0x24d   : > { %v3179_v17 = vadd.f32 %v3178_v16, %v3177_v15  ;;  %v4461_v15 = vld [vmem:[%s4369_s24 + $0x70] sm:$0xff]  ;;  %v4464_v16 = vld [vmem:[%s4369_s24 + $0x78] sm:$0xff] }
 0x24f   : > { %v1319_v18 = vpack.c.bf16 %v3179_v17, %v3176_v14  ;;  %v4456_v14 = vpack.c.bf16 %v4448_v12, %v4445_v11  ;;  %v4468_v17 = vpack.c.bf16 %v4464_v16, %v4461_v15 }
 0x251   : > { %v3180_v62 = vpop.f32.mrb[20].mxu1  ;;  %3333 = vmatprep.subr.bf16.mxu0 %v1319_v18 }
 0x252   : > { %v3181_v63 = vpop.f32.mrb[21].mxu1  ;;  %3334 = vmatpush3.bf16.msra.mxu0 %v1319_v18  ;;  %v3782_v18 = vld [vmem:[%s5571_s8 + $0x30] sm:$0xff]  }
 0x253   : > { %v3182_v20 = vadd.f32 %v3181_v63, %v3180_v62  ;;  %v3183_v21 = vpop.f32.mrb[22].mxu1  ;;  %3369 = vmatprep.subr.bf16.mxu1 %v3782_v18  ;;  %v3783_v62 = vld [vmem:[%s5571_s8 + $0x38] sm:$0xff]   ;;  %v4481_v63 = vld [vmem:[%s5572_s7] ss:$0 sm:$0xff] }
 0x254   : > { %v3184_v22 = vpop.f32.mrb[23].mxu1  ;;  %3370 = vmatpush3.bf16.msra.mxu1 %v3782_v18 }
 0x255   : > { %v3185_v23 = vadd.f32 %v3184_v22, %v3183_v21  ;;  %3371 = vmatprep.subr.bf16.mxu1 %v3783_v62 }
 0x257   : > { %v1320_v24 = vpack.c.bf16 %v3185_v23, %v3182_v20 }
 0x258   : > { %3372 = vmatpush3.bf16.msra.mxu1 %v3783_v62 }
 0x259   : > { %v3186_v25 = vpop.f32.mrb[24].mxu1  ;;  %3335 = vmatprep.subr.bf16.mxu0 %v1320_v24 }
 0x25a   : > { %v3187_v26 = vpop.f32.mrb[25].mxu1  ;;  %3336 = vmatpush3.bf16.msra.mxu0 %v1320_v24 }
 0x25b   : > { %v3188_v27 = vadd.f32 %v3187_v26, %v3186_v25  ;;  %v3189_v28 = vpop.f32.mrb[26].mxu1 }
 0x25c   : > { %v3190_v30 = vpop.f32.mrb[27].mxu1 }
 0x25d   : > { %v3191_v31 = vadd.f32 %v3190_v30, %v3189_v28 }
 0x25f   : > { %v1321_v33 = vpack.c.bf16 %v3191_v31, %v3188_v27 }
 0x261   : > { %v3192_v34 = vpop.f32.mrb[28].mxu1  ;;  %3337 = vmatprep.subr.bf16.mxu0 %v1321_v33 }
 0x262   : > { %v3193_v36 = vpop.f32.mrb[29].mxu1  ;;  %3338 = vmatpush3.bf16.msra.mxu0 %v1321_v33 }
 0x263   : > { %v3194_v37 = vadd.f32 %v3193_v36, %v3192_v34  ;;  %v3195_v51 = vpop.f32.mrb[30].mxu1 }
 0x264   : > { %v3196_v52 = vpop.f32.mrb[31].mxu1 }
 0x265   : > { %v3197_v53 = vadd.f32 %v3196_v52, %v3195_v51 }
 0x267   : > { %v1322_v56 = vpack.c.bf16 %v3197_v53, %v3194_v37 }
 0x269   : > { %3339 = vmatprep.subr.bf16.mxu0 %v1322_v56 }
 0x26a   : > { %3340 = vmatpush3.bf16.msra.mxu0 %v1322_v56 }
 0x26d   : > { %3342 = vmatmul.mubr.bf16.vlgmr.msra.gmra.mrb[32].mxu0 %v4408_v0 }
 0x26e   : > { %3345 = vmatprep.mubr.bf16.mxu0 %v4412_v1 }
 0x275   : > { %3346 = vmatmul.mubr.bf16.gmra.mrb[36].mxu0 %v4430_v7 }
 0x276   : > { %3349 = vmatprep.mubr.bf16.mxu0 %v4434_v8 }
 0x27d   : > { %3350 = vmatmul.mubr.bf16.gmra.mrb[40].mxu0 %v4452_v13 }
 0x27e   : > { %3353 = vmatprep.mubr.bf16.mxu0 %v4456_v14 }
 0x285   : > { %3354 = vmatmul.mubr.bf16.gmra.mrb[44].mxu0 %v4468_v17 }
 0x286   : > { %3405 = vmatprep.mubr.bf16.mxu0 %v4373_v19 }
 0x340   : > { %v3343_v20 = vpop.f32.mrb[32].mxu0 }
 0x341   : > { %v1373_v21 = vadd.f32 %v3343_v20, %v4481_v63  ;;  %v1364_v22 = vpop.f32.mrb[33].mxu0 }
 0x342   : > { %v1365_v23 = vadd.f32 %v4481_v63, %v1364_v22  ;;  %v3344_v24 = vpop.f32.mrb[34].mxu0 }
 0x343   : > { %v1429_v25 = vmax.f32 %v1373_v21, 0.0  ;;  %v1376_v26 = vadd.f32 %v3344_v24, %v4481_v63  ;;  %v1367_v27 = vpop.f32.mrb[35].mxu0 }
 0x344   : > { %v1427_v28 = vmax.f32 %v1365_v23, 0.0  ;;  %v1368_v30 = vadd.f32 %v4481_v63, %v1367_v27 }
 0x345   : > { %v1430_v31 = vmax.f32 %v1376_v26, 0.0  ;;  %v1445_v34 = vmin.f32 %v1429_v25, 6.0 }
 0x346   : > { %v1428_v33 = vmax.f32 %v1368_v30, 0.0  ;;  %v1443_v37 = vmin.f32 %v1427_v28, 6.0 }
 0x347   : > { %v1446_v36 = vmin.f32 %v1430_v31, 6.0 }
 0x348   : > { %v1444_v51 = vmin.f32 %v1428_v33, 6.0  ;;  %v3347_v52 = vpop.f32.mrb[36].mxu0 }
 0x349   : > { %v1460_v53 = vpack.c.bf16 %v1446_v36, %v1445_v34  ;;  %v1389_v56 = vadd.f32 %v3347_v52, %v4481_v63  ;;  %v1380_v18 = vpop.f32.mrb[37].mxu0 }
 0x34a   : > { %v1459_v62 = vpack.c.bf16 %v1444_v51, %v1443_v37  ;;  %v1381_v20 = vadd.f32 %v4481_v63, %v1380_v18  ;;  %v3348_v21 = vpop.f32.mrb[38].mxu0 }
 0x34b   : > { %v1433_v22 = vmax.f32 %v1389_v56, 0.0  ;;  %v1392_v23 = vadd.f32 %v3348_v21, %v4481_v63  ;;  %v1383_v24 = vpop.f32.mrb[39].mxu0 }
 0x34c   : > { %v1431_v27 = vmax.f32 %v1381_v20, 0.0  ;;  %v1384_v26 = vadd.f32 %v4481_v63, %v1383_v24  ;;  %3373 = vmatprep.mubr.bf16.mxu1 %v1459_v62 }
 0x34d   : > { %v1434_v25 = vmax.f32 %v1392_v23, 0.0  ;;  %3374 = vmatmul.mubr.bf16.vlgmr.msra.gmra.mrb[32].mxu1 %v1460_v53  ;;  %v1449_v30 = vmin.f32 %v1433_v22, 6.0 }
 0x34e   : > { %v1432_v28 = vmax.f32 %v1384_v26, 0.0  ;;  %v1447_v33 = vmin.f32 %v1431_v27, 6.0 }
 0x34f   : > { %v1450_v31 = vmin.f32 %v1434_v25, 6.0 }
 0x350   : > { %v1448_v34 = vmin.f32 %v1432_v28, 6.0  ;;  %v3351_v36 = vpop.f32.mrb[40].mxu0 }
 0x351   : > { %v1462_v37 = vpack.c.bf16 %v1450_v31, %v1449_v30  ;;  %v1405_v51 = vadd.f32 %v3351_v36, %v4481_v63  ;;  %v1396_v52 = vpop.f32.mrb[41].mxu0 }
 0x352   : > { %v1461_v56 = vpack.c.bf16 %v1448_v34, %v1447_v33  ;;  %v1397_v18 = vadd.f32 %v4481_v63, %v1396_v52  ;;  %v3352_v21 = vpop.f32.mrb[42].mxu0 }
 0x353   : > { %v1437_v20 = vmax.f32 %v1405_v51, 0.0  ;;  %v1408_v24 = vadd.f32 %v3352_v21, %v4481_v63  ;;  %v1399_v62 = vpop.f32.mrb[43].mxu0 }
 0x354   : > { %v1435_v23 = vmax.f32 %v1397_v18, 0.0  ;;  %v1400_v53 = vadd.f32 %v4481_v63, %v1399_v62  ;;  %3377 = vmatprep.mubr.bf16.mxu1 %v1461_v56 }
 0x355   : > { %v1438_v22 = vmax.f32 %v1408_v24, 0.0  ;;  %3378 = vmatmul.mubr.bf16.gmra.mrb[36].mxu1 %v1462_v37  ;;  %v1453_v26 = vmin.f32 %v1437_v20, 6.0 }
 0x356   : > { %v1436_v27 = vmax.f32 %v1400_v53, 0.0  ;;  %v1451_v28 = vmin.f32 %v1435_v23, 6.0 }
 0x357   : > { %v1454_v25 = vmin.f32 %v1438_v22, 6.0 }
 0x358   : > { %v1452_v30 = vmin.f32 %v1436_v27, 6.0  ;;  %v3355_v31 = vpop.f32.mrb[44].mxu0 }
 0x359   : > { %v1464_v33 = vpack.c.bf16 %v1454_v25, %v1453_v26  ;;  %v1421_v34 = vadd.f32 %v3355_v31, %v4481_v63  ;;  %v1412_v36 = vpop.f32.mrb[45].mxu0 }
 0x35a   : > { %v1463_v51 = vpack.c.bf16 %v1452_v30, %v1451_v28  ;;  %v1413_v52 = vadd.f32 %v4481_v63, %v1412_v36  ;;  %v3356_v21 = vpop.f32.mrb[46].mxu0  ;;  %v3784_v30 = vld [vmem:[%s5501_s10] sm:$0xff]  }
 0x35b   : > { %v1441_v18 = vmax.f32 %v1421_v34, 0.0  ;;  %v1424_v62 = vadd.f32 %v3356_v21, %v4481_v63  ;;  %v1415_v56 = vpop.f32.mrb[47].mxu0  ;;  %3421 = vmatprep.subr.bf16.mxu1 %v3784_v30 }
 0x35c   : > { %v1439_v24 = vmax.f32 %v1413_v52, 0.0  ;;  %v1416_v37 = vadd.f32 %v4481_v63, %v1415_v56  ;;  %3381 = vmatprep.mubr.bf16.mxu1 %v1463_v51  ;;  %v3785_v63 = vld [vmem:[%s5501_s10 + $0x8] sm:$0xff]   ;;  %3422 = vmatpush3.bf16.msra.mxu1 %v3784_v30 }
 0x35d   : > { %v1442_v20 = vmax.f32 %v1424_v62, 0.0  ;;  %3382 = vmatmul.mubr.bf16.gmra.mrb[40].mxu1 %v1464_v33  ;;  %v1457_v53 = vmin.f32 %v1441_v18, 6.0  ;;  %3423 = vmatprep.subr.bf16.mxu1 %v3785_v63 }
 0x35e   : > { %v1440_v23 = vmax.f32 %v1416_v37, 0.0  ;;  %v1455_v27 = vmin.f32 %v1439_v24, 6.0 }
 0x35f   : > { %v1458_v22 = vmin.f32 %v1442_v20, 6.0 }
 0x360   : > { %v1456_v26 = vmin.f32 %v1440_v23, 6.0  ;;  %3424 = vmatpush3.bf16.msra.mxu1 %v3785_v63 }
 0x361   : > { %v1466_v25 = vpack.c.bf16 %v1458_v22, %v1457_v53 }
 0x362   : > { %v1465_v28 = vpack.c.bf16 %v1456_v26, %v1455_v27 }
 0x364   : > { %3385 = vmatprep.mubr.bf16.mxu1 %v1465_v28 }
 0x365   : > { %3386 = vmatmul.mubr.bf16.gmra.mrb[44].mxu1 %v1466_v25 }
 0x420   : > { %v3375_v31 = vpop.f32.mrb[32].mxu1 }
 0x421   : > { %v1565_v33 = vpop.f32.mrb[33].mxu1 }
 0x422   : > { %v3376_v34 = vpop.f32.mrb[34].mxu1 }
 0x423   : > { %v1629_v36 = vpack.c.bf16 %v3376_v34, %v3375_v31  ;;  %v1568_v51 = vpop.f32.mrb[35].mxu1  ;;  %v3786_v34 = vld [vmem:[%s5501_s10 + $0x10] sm:$0xff]  }
 0x424   : > { %v1628_v52 = vpack.c.bf16 %v1568_v51, %v1565_v33  ;;  %3425 = vmatprep.subr.bf16.mxu1 %v3786_v34  ;;  %v4522_v51 = vld [vmem:[%s5500_s9] ss:$0 sm:$0xff] }
 0x425   : > { %3426 = vmatpush3.bf16.msra.mxu1 %v3786_v34 }
 0x426   : > { %3389 = vmatprep.subr.bf16.mxu0 %v1628_v52 }
 0x427   : > { %3390 = vmatpush3.bf16.msra.mxu0 %v1628_v52 }
 0x428   : > { %v3379_v21 = vpop.f32.mrb[36].mxu1  ;;  %3391 = vmatprep.subr.bf16.mxu0 %v1629_v36 }
 0x429   : > { %v1581_v18 = vpop.f32.mrb[37].mxu1 }
 0x42a   : > { %v3380_v62 = vpop.f32.mrb[38].mxu1 }
 0x42b   : > { %v1631_v56 = vpack.c.bf16 %v3380_v62, %v3379_v21  ;;  %v1584_v24 = vpop.f32.mrb[39].mxu1  ;;  %3392 = vmatpush3.bf16.msra.mxu0 %v1629_v36  ;;  %v3787_v36 = vld [vmem:[%s5501_s10 + $0x18] sm:$0xff]  }
 0x42c   : > { %v1630_v37 = vpack.c.bf16 %v1584_v24, %v1581_v18  ;;  %3427 = vmatprep.subr.bf16.mxu1 %v3787_v36 }
 0x42d   : > { %3428 = vmatpush3.bf16.msra.mxu1 %v3787_v36 }
 0x42e   : > { %3393 = vmatprep.subr.bf16.mxu0 %v1630_v37 }
 0x42f   : > { %3394 = vmatpush3.bf16.msra.mxu0 %v1630_v37 }
 0x430   : > { %v3383_v20 = vpop.f32.mrb[40].mxu1  ;;  %3395 = vmatprep.subr.bf16.mxu0 %v1631_v56 }
 0x431   : > { %v1597_v23 = vpop.f32.mrb[41].mxu1 }
 0x432   : > { %v3384_v53 = vpop.f32.mrb[42].mxu1 }
 0x433   : > { %v1633_v22 = vpack.c.bf16 %v3384_v53, %v3383_v20  ;;  %v1600_v27 = vpop.f32.mrb[43].mxu1  ;;  %3396 = vmatpush3.bf16.msra.mxu0 %v1631_v56 }
 0x434   : > { %v1632_v26 = vpack.c.bf16 %v1600_v27, %v1597_v23 }
 0x436   : > { %3397 = vmatprep.subr.bf16.mxu0 %v1632_v26 }
 0x437   : > { %3398 = vmatpush3.bf16.msra.mxu0 %v1632_v26 }
 0x438   : > { %v3387_v25 = vpop.f32.mrb[44].mxu1  ;;  %3399 = vmatprep.subr.bf16.mxu0 %v1633_v22 }
 0x439   : > { %v1613_v28 = vpop.f32.mrb[45].mxu1 }
 0x43a   : > { %v3388_v30 = vpop.f32.mrb[46].mxu1 }
 0x43b   : > { %v1635_v63 = vpack.c.bf16 %v3388_v30, %v3387_v25  ;;  %v1616_v31 = vpop.f32.mrb[47].mxu1  ;;  %3400 = vmatpush3.bf16.msra.mxu0 %v1633_v22 }
 0x43c   : > { %v1634_v33 = vpack.c.bf16 %v1616_v31, %v1613_v28 }
 0x43e   : > { %3401 = vmatprep.subr.bf16.mxu0 %v1634_v33 }
 0x43f   : > { %3402 = vmatpush3.bf16.msra.mxu0 %v1634_v33 }
 0x440   : > { %3403 = vmatprep.subr.bf16.mxu0 %v1635_v63 }
 0x443   : > { %3404 = vmatpush3.bf16.msra.mxu0 %v1635_v63 }
 0x446   : > { %3406 = vmatmul.mubr.bf16.vlgmr.msra.gmra.mrb[48].mxu0 %v4408_v0 }
 0x447   : > { %3409 = vmatprep.mubr.bf16.mxu0 %v4412_v1 }
 0x44e   : > { %3410 = vmatmul.mubr.bf16.gmra.mrb[52].mxu0 %v4430_v7 }
 0x44f   : > { %3413 = vmatprep.mubr.bf16.mxu0 %v4434_v8 }
 0x456   : > { %3414 = vmatmul.mubr.bf16.gmra.mrb[56].mxu0 %v4452_v13 }
 0x457   : > { %3417 = vmatprep.mubr.bf16.mxu0 %v4456_v14 }
 0x45e   : > { %3418 = vmatmul.mubr.bf16.gmra.mrb[60].mxu0 %v4468_v17 }
 0x45f   : > { %3461 = vmatprep.mubr.bf16.mxu0 %v4373_v19 }
 0x519   : > { %v3407_v52 = vpop.f32.mrb[48].mxu0 }
 0x51a   : > { %v1686_v19 = vadd.f32 %v3407_v52, %v4522_v51  ;;  %v1677_v21 = vpop.f32.mrb[49].mxu0 }
 0x51b   : > { %v1678_v18 = vadd.f32 %v4522_v51, %v1677_v21  ;;  %v3408_v62 = vpop.f32.mrb[50].mxu0 }
 0x51c   : > { %v1742_v56 = vmax.f32 %v1686_v19, 0.0  ;;  %v1689_v24 = vadd.f32 %v3408_v62, %v4522_v51  ;;  %v1680_v37 = vpop.f32.mrb[51].mxu0 }
 0x51d   : > { %v1740_v20 = vmax.f32 %v1678_v18, 0.0  ;;  %v1681_v23 = vadd.f32 %v4522_v51, %v1680_v37 }
 0x51e   : > { %v1743_v53 = vmax.f32 %v1689_v24, 0.0  ;;  %v1758_v27 = vmin.f32 %v1742_v56, 6.0 }
 0x51f   : > { %v1741_v22 = vmax.f32 %v1681_v23, 0.0  ;;  %v1756_v25 = vmin.f32 %v1740_v20, 6.0 }
 0x520   : > { %v1759_v26 = vmin.f32 %v1743_v53, 6.0 }
 0x521   : > { %v1757_v28 = vmin.f32 %v1741_v22, 6.0  ;;  %v3411_v30 = vpop.f32.mrb[52].mxu0 }
 0x522   : > { %v1773_v63 = vpack.c.bf16 %v1759_v26, %v1758_v27  ;;  %v1702_v31 = vadd.f32 %v3411_v30, %v4522_v51  ;;  %v1693_v33 = vpop.f32.mrb[53].mxu0 }
 0x523   : > { %v1772_v34 = vpack.c.bf16 %v1757_v28, %v1756_v25  ;;  %v1694_v36 = vadd.f32 %v4522_v51, %v1693_v33  ;;  %v3412_v52 = vpop.f32.mrb[54].mxu0 }
 0x524   : > { %v1746_v19 = vmax.f32 %v1702_v31, 0.0  ;;  %v1705_v21 = vadd.f32 %v3412_v52, %v4522_v51  ;;  %v1696_v18 = vpop.f32.mrb[55].mxu0 }
 0x525   : > { %v1744_v62 = vmax.f32 %v1694_v36, 0.0  ;;  %v1697_v56 = vadd.f32 %v4522_v51, %v1696_v18  ;;  %3429 = vmatprep.mubr.msk.bf16.mxu1 %vm1812_vm0, %v1772_v34 }
 0x526   : > { %v1747_v24 = vmax.f32 %v1705_v21, 0.0  ;;  %3430 = vmatmul.mubr.msk.bf16.vlgmr.msra.gmra.mrb[48].mxu1 %vm1812_vm0, %v1773_v63  ;;  %v1762_v20 = vmin.f32 %v1746_v19, 6.0 }
 0x527   : > { %v1745_v37 = vmax.f32 %v1697_v56, 0.0  ;;  %v1760_v53 = vmin.f32 %v1744_v62, 6.0 }
 0x528   : > { %v1763_v23 = vmin.f32 %v1747_v24, 6.0 }
 0x529   : > { %v1761_v22 = vmin.f32 %v1745_v37, 6.0  ;;  %v3415_v27 = vpop.f32.mrb[56].mxu0 }
 0x52a   : > { %v1775_v26 = vpack.c.bf16 %v1763_v23, %v1762_v20  ;;  %v1718_v25 = vadd.f32 %v3415_v27, %v4522_v51  ;;  %v1709_v28 = vpop.f32.mrb[57].mxu0 }
 0x52b   : > { %v1774_v30 = vpack.c.bf16 %v1761_v22, %v1760_v53  ;;  %v1710_v31 = vadd.f32 %v4522_v51, %v1709_v28  ;;  %v3416_v33 = vpop.f32.mrb[58].mxu0 }
 0x52c   : > { %v1750_v36 = vmax.f32 %v1718_v25, 0.0  ;;  %v1721_v34 = vadd.f32 %v3416_v33, %v4522_v51  ;;  %v1712_v52 = vpop.f32.mrb[59].mxu0 }
 0x52d   : > { %v1748_v21 = vmax.f32 %v1710_v31, 0.0  ;;  %v1713_v63 = vadd.f32 %v4522_v51, %v1712_v52  ;;  %3433 = vmatprep.mubr.msk.bf16.mxu1 %vm1812_vm0, %v1774_v30 }
 0x52e   : > { %v1751_v19 = vmax.f32 %v1721_v34, 0.0  ;;  %3434 = vmatmul.mubr.msk.bf16.gmra.mrb[52].mxu1 %vm1812_vm0, %v1775_v26  ;;  %v1766_v62 = vmin.f32 %v1750_v36, 6.0 }
 0x52f   : > { %v1749_v18 = vmax.f32 %v1713_v63, 0.0  ;;  %v1764_v24 = vmin.f32 %v1748_v21, 6.0 }
 0x530   : > { %v1767_v56 = vmin.f32 %v1751_v19, 6.0 }
 0x531   : > { %v1765_v37 = vmin.f32 %v1749_v18, 6.0  ;;  %v3419_v20 = vpop.f32.mrb[60].mxu0 }
 0x532   : > { %v1777_v23 = vpack.c.bf16 %v1767_v56, %v1766_v62  ;;  %v1734_v53 = vadd.f32 %v3419_v20, %v4522_v51  ;;  %v1725_v22 = vpop.f32.mrb[61].mxu0 }
 0x533   : > { %v1776_v27 = vpack.c.bf16 %v1765_v37, %v1764_v24  ;;  %v1726_v25 = vadd.f32 %v4522_v51, %v1725_v22  ;;  %v3420_v28 = vpop.f32.mrb[62].mxu0 }
 0x534   : > { %v1754_v31 = vmax.f32 %v1734_v53, 0.0  ;;  %v1737_v30 = vadd.f32 %v3420_v28, %v4522_v51  ;;  %v1728_v33 = vpop.f32.mrb[63].mxu0 }
 0x535   : > { %v1752_v34 = vmax.f32 %v1726_v25, 0.0  ;;  %v1729_v26 = vadd.f32 %v4522_v51, %v1728_v33  ;;  %3437 = vmatprep.mubr.msk.bf16.mxu1 %vm1812_vm0, %v1776_v27 }
 0x536   : > { %v1755_v36 = vmax.f32 %v1737_v30, 0.0  ;;  %3438 = vmatmul.mubr.msk.bf16.gmra.mrb[56].mxu1 %vm1812_vm0, %v1777_v23  ;;  %v1770_v21 = vmin.f32 %v1754_v31, 6.0 }
 0x537   : > { %v1753_v52 = vmax.f32 %v1729_v26, 0.0  ;;  %v1768_v19 = vmin.f32 %v1752_v34, 6.0 }
 0x538   : > { %v1771_v63 = vmin.f32 %v1755_v36, 6.0 }
 0x539   : > { %v1769_v18 = vmin.f32 %v1753_v52, 6.0 }
 0x53a   : > { %v1779_v62 = vpack.c.bf16 %v1771_v63, %v1770_v21 }
 0x53b   : > { %v1778_v56 = vpack.c.bf16 %v1769_v18, %v1768_v19 }
 0x53d   : > { %3441 = vmatprep.mubr.msk.bf16.mxu1 %vm1812_vm0, %v1778_v56 }
 0x53e   : > { %3442 = vmatmul.mubr.msk.bf16.gmra.mrb[60].mxu1 %vm1812_vm0, %v1779_v62 }
 0x5f9   : > { %v3431_v24 = vpop.f32.mrb[48].mxu1 }
 0x5fa   : > { %v1871_v37 = vpop.f32.mrb[49].mxu1 }
 0x5fb   : > { %v3432_v20 = vpop.f32.mrb[50].mxu1 }
 0x5fc   : > { %v1935_v51 = vpack.c.bf16 %v3432_v20, %v3431_v24  ;;  %v1874_v53 = vpop.f32.mrb[51].mxu1  ;;  %v3945_v20 = vmov 0.0  }
 0x5fd   : > { %v1934_v22 = vpack.c.bf16 %v1874_v53, %v1871_v37  ;;  %v3943_v37 = vmov 0.0|0.0   ;;  %3509 = vmatprep.mubr.msk.f32.mxu1 %vm3944_vm1, %v3945_v20 }
 0x5fe   : > { %3582 = vmatprep.subr.bf16.mxu1 %v3943_v37 }
 0x5ff   : > { %3445 = vmatprep.subr.bf16.mxu0 %v1934_v22 }
 0x600   : > { %3446 = vmatpush3.bf16.msra.mxu0 %v1934_v22 }
 0x601   : > { %v3435_v23 = vpop.f32.mrb[52].mxu1  ;;  %3447 = vmatprep.subr.bf16.mxu0 %v1935_v51 }
 0x602   : > { %v1887_v27 = vpop.f32.mrb[53].mxu1 }
 0x603   : > { %v3436_v25 = vpop.f32.mrb[54].mxu1 }
 0x604   : > { %v1937_v28 = vpack.c.bf16 %v3436_v25, %v3435_v23  ;;  %v1890_v31 = vpop.f32.mrb[55].mxu1  ;;  %3448 = vmatpush3.bf16.msra.mxu0 %v1935_v51 }
 0x605   : > { %v1936_v30 = vpack.c.bf16 %v1890_v31, %v1887_v27 }
 0x607   : > { %3449 = vmatprep.subr.bf16.mxu0 %v1936_v30 }
 0x608   : > { %3450 = vmatpush3.bf16.msra.mxu0 %v1936_v30 }
 0x609   : > { %v3439_v33 = vpop.f32.mrb[56].mxu1  ;;  %3451 = vmatprep.subr.bf16.mxu0 %v1937_v28 }
 0x60a   : > { %v1903_v34 = vpop.f32.mrb[57].mxu1 }
 0x60b   : > { %v3440_v26 = vpop.f32.mrb[58].mxu1 }
 0x60c   : > { %v1939_v36 = vpack.c.bf16 %v3440_v26, %v3439_v33  ;;  %v1906_v52 = vpop.f32.mrb[59].mxu1  ;;  %3452 = vmatpush3.bf16.msra.mxu0 %v1937_v28 }
 0x60d   : > { %v1938_v21 = vpack.c.bf16 %v1906_v52, %v1903_v34 }
 0x60f   : > { %3453 = vmatprep.subr.bf16.mxu0 %v1938_v21 }
 0x610   : > { %3454 = vmatpush3.bf16.msra.mxu0 %v1938_v21 }
 0x611   : > { %v3443_v63 = vpop.f32.mrb[60].mxu1  ;;  %3455 = vmatprep.subr.bf16.mxu0 %v1939_v36 }
 0x612   : > { %v1919_v19 = vpop.f32.mrb[61].mxu1 }
 0x613   : > { %v3444_v18 = vpop.f32.mrb[62].mxu1 }
 0x614   : > { %v1941_v62 = vpack.c.bf16 %v3444_v18, %v3443_v63  ;;  %v1922_v56 = vpop.f32.mrb[63].mxu1  ;;  %3456 = vmatpush3.bf16.msra.mxu0 %v1939_v36 }
 0x615   : > { %v1940_v24 = vpack.c.bf16 %v1922_v56, %v1919_v19 }
 0x617   : > { %3457 = vmatprep.subr.bf16.mxu0 %v1940_v24 }
 0x618   : > { %3458 = vmatpush3.bf16.msra.mxu0 %v1940_v24 }
 0x619   : > { %3459 = vmatprep.subr.bf16.mxu0 %v1941_v62 }
 0x61c   : > { %3460 = vmatpush3.bf16.msra.mxu0 %v1941_v62 }
 0x61d   : > { %3614 = vmatprep.subr.bf16.mxu0 %v3943_v37 }
 0x61f   : > { %3462 = vmatmul.mubr.bf16.vlgmr.msra.gmra.mrb[64].mxu0 %v4408_v0  ;;  %v4564_v0 = vld [vmem:[%s5502_s11] ss:$0 sm:$0xff] }
 0x620   : > { %3465 = vmatprep.mubr.bf16.mxu0 %v4412_v1 }
 0x627   : > { %3466 = vmatmul.mubr.bf16.gmra.mrb[68].mxu0 %v4430_v7 }
 0x628   : > { %3469 = vmatprep.mubr.bf16.mxu0 %v4434_v8 }
 0x62f   : > { %3470 = vmatmul.mubr.bf16.gmra.mrb[72].mxu0 %v4452_v13 }
 0x630   : > { %3473 = vmatprep.mubr.bf16.mxu0 %v4456_v14 }
 0x637   : > { %3474 = vmatmul.mubr.bf16.gmra.mrb[76].mxu0 %v4468_v17 }
 0x638   : > { %3544 = vmatprep.mubr.msk.f32.mxu0 %vm3944_vm1, %v3945_v20 }
 0x6f2   : > { %v3463_v1 = vpop.f32.mrb[64].mxu0 }
 0x6f3   : > { %v1992_v7 = vadd.f32 %v3463_v1, %v4564_v0  ;;  %v1983_v8 = vpop.f32.mrb[65].mxu0 }
 0x6f4   : > { %v1984_v13 = vadd.f32 %v4564_v0, %v1983_v8  ;;  %v3464_v14 = vpop.f32.mrb[66].mxu0 }
 0x6f5   : > { %v2048_v17 = vmax.f32 %v1992_v7, 0.0  ;;  %v1995_v51 = vadd.f32 %v3464_v14, %v4564_v0  ;;  %v1986_v53 = vpop.f32.mrb[67].mxu0 }
 0x6f6   : > { %v2046_v22 = vmax.f32 %v1984_v13, 0.0  ;;  %v1987_v23 = vadd.f32 %v4564_v0, %v1986_v53 }
 0x6f7   : > { %v2049_v27 = vmax.f32 %v1995_v51, 0.0  ;;  %v2064_v28 = vmin.f32 %v2048_v17, 6.0 }
 0x6f8   : > { %v2047_v25 = vmax.f32 %v1987_v23, 0.0  ;;  %v2062_v30 = vmin.f32 %v2046_v22, 6.0 }
 0x6f9   : > { %v2065_v31 = vmin.f32 %v2049_v27, 6.0 }
 0x6fa   : > { %v2063_v33 = vmin.f32 %v2047_v25, 6.0  ;;  %v3467_v34 = vpop.f32.mrb[68].mxu0 }
 0x6fb   : > { %v3587_v26 = vpack.c.bf16 %v2065_v31, %v2064_v28  ;;  %v2008_v52 = vadd.f32 %v3467_v34, %v4564_v0  ;;  %v1999_v21 = vpop.f32.mrb[69].mxu0 }
 0x6fc   : > { %v3583_v63 = vpack.c.bf16 %v2063_v33, %v2062_v30  ;;  %v2000_v19 = vadd.f32 %v4564_v0, %v1999_v21  ;;  %v3468_v18 = vpop.f32.mrb[70].mxu0 }
 0x6fd   : > { %v2052_v62 = vmax.f32 %v2008_v52, 0.0  ;;  %v2011_v56 = vadd.f32 %v3468_v18, %v4564_v0  ;;  %v2002_v24 = vpop.f32.mrb[71].mxu0 }
 0x6fe   : > { %3585 = vmatpush3.bf16.xpose.msk.msra.mxu1 %vm4572_vm3, %v3583_v63  ;;  %3616 = vmatpush3.bf16.msra.mxu0 %v3583_v63  ;;  %v2050_v1 = vmax.f32 %v2000_v19, 0.0  ;;  %v2003_v7 = vadd.f32 %v4564_v0, %v2002_v24 }
 0x6ff   : > { %v2068_v8 = vmin.f32 %v2052_v62, 6.0  ;;  %3617 = vmatprep.subr.bf16.mxu0 %v3943_v37  ;;  %v2053_v13 = vmax.f32 %v2011_v56, 0.0  ;;  %3586 = vmatprep.subr.bf16.mxu1 %v3943_v37 }
 0x700   : > { %v2066_v14 = vmin.f32 %v2050_v1, 6.0  ;;  %v2051_v17 = vmax.f32 %v2003_v7, 0.0 }
 0x701   : > { %v2069_v51 = vmin.f32 %v2053_v13, 6.0 }
 0x702   : > { %3619 = vmatpush3.bf16.msra.mxu0 %v3587_v26  ;;  %v2067_v53 = vmin.f32 %v2051_v17, 6.0  ;;  %v3471_v22 = vpop.f32.mrb[72].mxu0 }
 0x703   : > { %v3595_v23 = vpack.c.bf16 %v2069_v51, %v2068_v8  ;;  %3620 = vmatprep.subr.bf16.mxu0 %v3943_v37  ;;  %v2024_v27 = vadd.f32 %v3471_v22, %v4564_v0  ;;  %v2015_v25 = vpop.f32.mrb[73].mxu0 }
 0x704   : > { %v3591_v28 = vpack.c.bf16 %v2067_v53, %v2066_v14  ;;  %v2016_v31 = vadd.f32 %v4564_v0, %v2015_v25  ;;  %v3472_v30 = vpop.f32.mrb[74].mxu0 }
 0x705   : > { %v2056_v33 = vmax.f32 %v2024_v27, 0.0  ;;  %v2027_v34 = vadd.f32 %v3472_v30, %v4564_v0  ;;  %v2018_v52 = vpop.f32.mrb[75].mxu0 }
 0x706   : > { %3589 = vmatpush3.bf16.xpose.msk.msra.mxu1 %vm4572_vm3, %v3587_v26  ;;  %3622 = vmatpush3.bf16.msra.mxu0 %v3591_v28  ;;  %v2054_v21 = vmax.f32 %v2016_v31, 0.0  ;;  %v2019_v63 = vadd.f32 %v4564_v0, %v2018_v52 }
 0x707   : > { %3590 = vmatprep.subr.bf16.mxu1 %v3943_v37  ;;  %3623 = vmatprep.subr.bf16.mxu0 %v3943_v37  ;;  %v2072_v19 = vmin.f32 %v2056_v33, 6.0  ;;  %v2057_v18 = vmax.f32 %v2027_v34, 0.0 }
 0x708   : > { %v2070_v62 = vmin.f32 %v2054_v21, 6.0  ;;  %v2055_v56 = vmax.f32 %v2019_v63, 0.0 }
 0x709   : > { %v2073_v24 = vmin.f32 %v2057_v18, 6.0 }
 0x70a   : > { %3625 = vmatpush3.bf16.msra.mxu0 %v3595_v23  ;;  %v2071_v1 = vmin.f32 %v2055_v56, 6.0  ;;  %v3475_v7 = vpop.f32.mrb[76].mxu0 }
 0x70b   : > { %v3603_v8 = vpack.c.bf16 %v2073_v24, %v2072_v19  ;;  %3626 = vmatprep.subr.bf16.mxu0 %v3943_v37  ;;  %v2040_v26 = vadd.f32 %v3475_v7, %v4564_v0  ;;  %v2031_v13 = vpop.f32.mrb[77].mxu0 }
 0x70c   : > { %v3599_v14 = vpack.c.bf16 %v2071_v1, %v2070_v62  ;;  %v2032_v17 = vadd.f32 %v4564_v0, %v2031_v13  ;;  %v3476_v51 = vpop.f32.mrb[78].mxu0  ;;  %v2225_v62 = vstv %s2201_s23  ;;  %s5522_s23 = scalar_lea.vmem [#allocation8], %s4644_s21 }
 0x70d   : > { %v2060_v53 = vmax.f32 %v2040_v26, 0.0  ;;  %v2043_v22 = vadd.f32 %v3476_v51, %v4564_v0  ;;  %v2034_v27 = vpop.f32.mrb[79].mxu0 }
 0x70e   : > { %3593 = vmatpush3.bf16.xpose.msk.msra.mxu1 %vm4572_vm3, %v3591_v28  ;;  %3628 = vmatpush3.bf16.msra.mxu0 %v3599_v14  ;;  %v2058_v25 = vmax.f32 %v2032_v17, 0.0  ;;  %v2035_v31 = vadd.f32 %v4564_v0, %v2034_v27  ;;  %v2078_v0 = vld [vmem:[%s5503_s12] sm:$0xff]  ;;  %v4630_v28 = vand.u32 127, %v807_v57 }
 0x70f   : > { %3594 = vmatprep.subr.bf16.mxu1 %v3943_v37  ;;  %3629 = vmatprep.subr.bf16.mxu0 %v3943_v37  ;;  %v2076_v30 = vmin.f32 %v2060_v53, 6.0  ;;  %v2061_v33 = vmax.f32 %v2043_v22, 0.0 }
 0x710   : > { %v2074_v34 = vmin.f32 %v2058_v25, 6.0  ;;  %v2059_v52 = vmax.f32 %v2035_v31, 0.0  ;;  %vm2223_vm5 = vcmp.ge.s32.totalorder %v4630_v28, 8 }
 0x711   : > { %v2077_v21 = vmin.f32 %v2061_v33, 6.0 }
 0x712   : > { %3631 = vmatpush3.bf16.msra.mxu0 %v3603_v8  ;;  %v2075_v63 = vmin.f32 %v2059_v52, 6.0 }
 0x713   : > { %v3611_v19 = vpack.c.bf16 %v2077_v21, %v2076_v30  ;;  %3632 = vmatprep.subr.bf16.mxu0 %v3943_v37  ;;  %v2205_v30 = vcvt.s32.f32 %v4630_v28 }
 0x714   : > { %v3607_v18 = vpack.c.bf16 %v2075_v63, %v2074_v34 }
 0x716   : > { %3597 = vmatpush3.bf16.xpose.msk.msra.mxu1 %vm4572_vm3, %v3595_v23  ;;  %3634 = vmatpush3.bf16.msra.mxu0 %v3607_v18  ;;  %v4627_v23 = vld [vmem:[%s721_s0] sm:$0x1]  ;;  %s4717_s0 = scalar_lea.hbm %s5506_s15, %s5524_s27 }
 0x717   : > { %3598 = vmatprep.subr.bf16.mxu1 %v3943_v37  ;;  %3635 = vmatprep.subr.bf16.mxu0 %v3943_v37  ;;  %vm2224_vm4 = vcmp.gt.f32.partialorder %v4627_v23, 0.5 }
 0x71a   : > { %3637 = vmatpush3.bf16.msra.mxu0 %v3611_v19 }
 0x71b   : > { %3638 = vmatprep.subr.bf16.mxu0 %v3943_v37 }
 0x71e   : > { %3601 = vmatpush3.bf16.xpose.msk.msra.mxu1 %vm4572_vm3, %v3599_v14 }
 0x71f   : > { %3602 = vmatprep.subr.bf16.mxu1 %v3943_v37 }
 0x726   : > { %3605 = vmatpush3.bf16.xpose.msk.msra.mxu1 %vm4572_vm3, %v3603_v8 }
 0x727   : > { %3606 = vmatprep.subr.bf16.mxu1 %v3943_v37 }
 0x72e   : > { %3609 = vmatpush3.bf16.xpose.msk.msra.mxu1 %vm4572_vm3, %v3607_v18  ;;  %v3946_v18 = vmov 1.0  }
 0x72f   : > { %3610 = vmatprep.subr.bf16.mxu1 %v3943_v37 }
 0x736   : > { %3613 = vmatpush3.bf16.xpose.msk.msra.mxu1 %vm4572_vm3, %v3611_v19 }
 0x73d   : > { %3510 = vmatmul.mubr.msk.f32.vlgmr.msra.gmra.mrb[64].mxu1 %vm2079_vm2, %v2078_v0  ;;  %v2336_v0 = vstv %s3121_s14  ;;  %s3836_s14 = scalar_lea.vmem %s2795_s18, 16 }
 0x73e   : > { %p3837_p10 = scmp.ne.s32.totalorder %s2795_s18, %s3836_s14 }
 0x740   : > { %p3838_p0 = pnand %p3837_p10, %p5576_p12 }
 0x742   : > { %p3839_p7 = pneg %p3838_p0 }
 0x810   : > { %v4632_v56 = vpop.f32.mrb[64].mxu1 }
 0x811   : > { %v2226_v36 = vadd.f32 %v2225_v62, %v4632_v56  ;;  %v3511_v24 = vpop.f32.mrb[65].mxu1 }
 0x813   : > { %v2227_v1 = vsel %vm2224_vm4, 0.0, %v2226_v36 }
 0x814   : > { %v2228_v7 = vsel %vm2223_vm5, -1e+30, %v2227_v1 }
 0x815   : > { %v2230_v57 = vsel %vm2229_vm6, %v2228_v7, -inf }
 0x816   : > { %2231 = vmax.xlane.f32.xlu0 %v2230_v57 }
 0x8a3   : > { %v2232_v8 = vpop.xlane.xlu0 %2231 }
 0x8a4   : > { %v2233_v26 = vsub.f32 %v2228_v7, %v2232_v8 }
 0x8a6   : > { %v2234_v13 = vmul.f32 1.442695, %v2233_v26 }
 0x8a8   : > { %3788 = vpow2.f32 %v2234_v13 }
 0x8b2   : > { %v3789_v14 = vpop.eup %3788 }
 0x8b3   : > { %v2236_v17 = vsel %vm2229_vm6, %v3789_v14, 0.0 }
 0x8b4   : > { %2237 = vadd.xlane.f32.xlu0 %v2236_v17 }
 0x941   : > { %v2238_v51 = vpop.xlane.xlu0 %2237 }
 0x942   : > { %3790 = vrcp.f32 %v2238_v51 }
 0x94c   : > { %v3791_v53 = vpop.eup %3790 }
 0x94d   : > { %v2240_v22 = vmul.f32 %v3791_v53, %v3789_v14 }
 0x94f   : > { %v2242_v27 = vsel %vm2224_vm4, -1.0, %v2240_v22  ;;  %2241 = vst [vmem:[%s678_s29] sm:$0x1] %v2240_v22 }
 0x950   : > { %v2243_v25 = vsel %vm2223_vm5, -2.0, %v2242_v27 }
 0x951   : > { %v2244_v31 = vsel %vm2229_vm6, %v2243_v25, -inf }
 0x952   : > { %2245 = vmax.xlane.f32.xlu1 %v2244_v31 }
 0x9df   : > { %v2246_v33 = vpop.xlane.xlu1 %2245 }
 0x9e0   : > { %vm2247_vm7 = vcmp.eq.f32.partialorder %v2243_v25, %v2246_v33 }
 0x9e1   : > { %v2248_v34 = vsel %vm2247_vm7, %v2205_v30, 128.0 }
 0x9e2   : > { %v2249_v52 = vsel %vm2229_vm6, %v2248_v34, inf }
 0x9e3   : > { %2250 = vmin.xlane.f32.xlu1 %v2249_v52 }
 0xa70   : > { %v2251_v21 = vpop.xlane.xlu1 %2250 }
 0xa71   : > { %v3662_v63 = vtrunc.f32 %v2251_v21 }
 0xa73   : > { %v4658_v19 = vcvt.f32.s32 %v3662_v63 }
 0xa75   : > { %vm2253_vm8 = vcmp.eq.s32.totalorder %v4630_v28, %v4658_v19 }
 0xa76   : > { %3545 = vmatmul.mubr.msk.f32.vlgmr.msra.gmra.mrb[80].mxu0 %vm2253_vm8, %v3946_v18 }
 0xa77   : > { %3640 = vmatpush3.bf16.msra.mxu0 %v4231_v29  ;;  %3579 = vmatprep.mubr.msk.f32.mxu0 %vm3944_vm1, %v3945_v20  ;;  %v2326_v29 = vld [vmem:[%s5504_s13] sm:$0x1] }
 0xa78   : > { %3641 = vmatprep.subr.bf16.mxu0 %v3943_v37 }
 0xa7b   : > { %3643 = vmatpush3.bf16.msra.mxu0 %v4237_v32 }
 0xa7c   : > { %3644 = vmatprep.subr.bf16.mxu0 %v3943_v37 }
 0xa7f   : > { %3646 = vmatpush3.bf16.msra.mxu0 %v4243_v35 }
 0xa80   : > { %3647 = vmatprep.subr.bf16.mxu0 %v3943_v37 }
 0xa83   : > { %3649 = vmatpush3.bf16.msra.mxu0 %v4249_v38 }
 0xa84   : > { %3650 = vmatprep.subr.bf16.mxu0 %v3943_v37 }
 0xa87   : > { %3652 = vmatpush3.bf16.msra.mxu0 %v4261_v41 }
 0xa88   : > { %3653 = vmatprep.subr.bf16.mxu0 %v3943_v37 }
 0xa8b   : > { %3655 = vmatpush3.bf16.msra.mxu0 %v4273_v44 }
 0xa8c   : > { %3656 = vmatprep.subr.bf16.mxu0 %v3943_v37 }
 0xa8f   : > { %3658 = vmatpush3.bf16.msra.mxu0 %v4285_v47 }
 0xa90   : > { %3659 = vmatprep.subr.bf16.mxu0 %v3943_v37 }
 0xa93   : > { %3661 = vmatpush3.bf16.msra.mxu0 %v4297_v50 }
 0xb49   : > { %v2322_v32 = vpop.f32.mrb[80].mxu0 }
 0xb4a   : > { %v2327_v35 = vmul.f32 %v2326_v29, %v2322_v32  ;;  %v3546_v38 = vpop.f32.mrb[81].mxu0 }
 0xb4c   : > { %v2329_v41 = vsel %vm2328_vm9, %v2327_v35, 0.0 }
 0xb4d   : > { %2330 = vadd.xlane.f32.xlu0 %v2329_v41 }
 0xbda   : > { %v2331_v44 = vpop.xlane.xlu0 %2330 }
 0xbdb   : > { %v2333_v20 = vrot.slane %v2331_v44, 7 }
 0xbdd   : > { %v2335_v47 = vadd.f32 %v2333_v20, %v4632_v56 }
 0xbdf   : > { %v2337_v62 = vadd.f32 %v2336_v0, %v2335_v47 }
 0xbe1   : > { %v2339_v37 = vrot.slane %v2337_v62, 1 }
 0xbe3   : > { %v2341_v50 = vsel %vm2253_vm8, 0.0, %v2339_v37 }
 0xbe4   : > { %v2342_v36 = vsel %vm2223_vm5, -1e+30, %v2341_v50 }
 0xbe5   : > { %v2343_v24 = vsel %vm2229_vm6, %v2342_v36, -inf }
 0xbe6   : > { %2344 = vmax.xlane.f32.xlu1 %v2343_v24 }
 0xc73   : > { %v2345_v1 = vpop.xlane.xlu1 %2344 }
 0xc74   : > { %v2346_v7 = vsub.f32 %v2342_v36, %v2345_v1 }
 0xc76   : > { %v2347_v57 = vmul.f32 1.442695, %v2346_v7 }
 0xc78   : > { %3792 = vpow2.f32 %v2347_v57 }
 0xc82   : > { %v3793_v8 = vpop.eup %3792 }
 0xc83   : > { %v2349_v56 = vsel %vm2229_vm6, %v3793_v8, 0.0 }
 0xc84   : > { %2350 = vadd.xlane.f32.xlu0 %v2349_v56 }
 0xd11   : > { %v2351_v26 = vpop.xlane.xlu0 %2350 }
 0xd12   : > { %3794 = vrcp.f32 %v2351_v26 }
 0xd1c   : > { %v3795_v13 = vpop.eup %3794 }
 0xd1d   : > { %v2353_v14 = vmul.f32 %v3795_v13, %v3793_v8 }
 0xd1f   : > { %v2355_v17 = vsel %vm2253_vm8, -1.0, %v2353_v14  ;;  %2354 = vst [vmem:[%s5522_s23] sm:$0x1] %v2353_v14  ;;  %s3947_s23 = smov [#allocation7]  }
 0xd20   : > { %v2356_v51 = vsel %vm2223_vm5, -2.0, %v2355_v17  ;;  %s3840_s3 = sshll.u32 %s3947_s23, 4  ;;  %s3841_s3 = int_to_ptr.vmem [resolvable:$false] %s3840_s3 }
 0xd21   : > { %v2357_v53 = vsel %vm2229_vm6, %v2356_v51, -inf  ;;  %s3842_s5 = scalar_lea.vmem %s3841_s3, 32  ;;  %p3843_p8 = scmp.lt.s32.totalorder %s2795_s18, %s3841_s3 }
 0xd22   : > { %2358 = vmax.xlane.f32.xlu1 %v2357_v53  ;;  %p3844_p11 = scmp.lt.s32.totalorder %s3842_s5, %s3836_s14 }
 0xd24   : > { %p3845_p13 = por %p3844_p11, %p3843_p8 }
 0xd26   : > { %p3846_p1 = pnand %p3845_p13, %p3839_p7 }
 0xdaf   : > { %v2359_v22 = vpop.xlane.xlu1 %2358 }
 0xdb0   : > { %vm2360_vm10 = vcmp.eq.f32.partialorder %v2356_v51, %v2359_v22 }
 0xdb1   : > { %v2361_v27 = vsel %vm2360_vm10, %v2205_v30, 128.0 }
 0xdb2   : > { %v2362_v25 = vsel %vm2229_vm6, %v2361_v27, inf }
 0xdb3   : > { %2363 = vmin.xlane.f32.xlu0 %v2362_v25 }
 0xe40   : > { %v2364_v31 = vpop.xlane.xlu0 %2363 }
 0xe41   : > { %v3664_v33 = vtrunc.f32 %v2364_v31 }
 0xe43   : > { %v4705_v34 = vcvt.f32.s32 %v3664_v33 }
 0xe45   : > { %vm2366_vm11 = vcmp.eq.s32.totalorder %v4630_v28, %v4705_v34 }
 0xe46   : > { %3580 = vmatmul.mubr.msk.f32.vlgmr.msra.gmra.mrb[82].mxu0 %vm2366_vm11, %v3946_v18  ;;  %v2367_v52 = vsel %vm2366_vm11, %v4627_v23, 0.0 }
 0xe47   : > { %v2368_v21 = vsel %vm2229_vm6, %v2367_v52, 0.0 }
 0xe48   : > { %2369 = vadd.xlane.f32.xlu1 %v2368_v21 }
 0xe49   : > { %3849 = shalt.err (!%p3846_p1)
}
 0xe4a   : > { %s3850_s29 = scalar_lea.hbm %s4717_s0, 16  ;;  %s3854_s23 = scalar_lea.hbm %s5506_s15, 32 }
 0xe4b   : > { %p3851_p2 = scmp.ne.s32.totalorder %s4717_s0, %s3850_s29  ;;  %p3855_p9 = scmp.lt.u32.totalorder %s4717_s0, %s5506_s15 }
 0xe4c   : > { %p3856_p5 = scmp.lt.u32.totalorder %s3854_s23, %s3850_s29  ;;  %p3858_p10 = scmp.lt.u32.totalorder %s3850_s29, %s4717_s0 }
 0xe4d   : > { %p3852_p3 = pnand %p3851_p2, %p5576_p12 }
 0xe4e   : > { %p3857_p6 = por %p3856_p5, %p3855_p9 }
 0xe4f   : > { %p3853_p4 = pneg %p3852_p3 }
 0xe50   : > { %p3859_p0 = por %p3858_p10, %p3857_p6 }
 0xe52   : > { %p3860_p7 = pnand %p3859_p0, %p3853_p4 }
 0xe54   : > { %3863 = shalt.err (!%p3860_p7)
}
 0xe55   : > { %3674 = dma.vmem_to_hbm [thread:$0]  (%p5576_p12), %s2795_s18, 16, %s4717_s0, %s2762_s25  }
 0xe56   : > { %s5577_s5 = sshll.u32 %s4075_s2, 4  ;;  %s5578_s1 = scalar_lea.vmem [#allocation8], %s4644_s21 }
 0xe57   : > { %s4744_s27 = scalar_lea.hbm %s5507_s16, %s5577_s5  ;;  %s2807_s23 = sshll.u32 %s5578_s1, 4  ;;  %s2808_s23 = int_to_ptr.vmem [resolvable:$true] %s2807_s23 }
 0xe58   : > { %s2766_s29 = scalar_lea.sflag [#allocation9], %s4644_s21  ;;  %s3864_s3 = scalar_lea.vmem %s2808_s23, 16 }
 0xe59   : > { %p3865_p8 = scmp.ne.s32.totalorder %s2808_s23, %s3864_s3  ;;  %s3948_s6 = smov [#allocation8]  }
 0xe5a   : > { %s3868_s7 = sshll.u32 %s3948_s6, 4  ;;  %s3869_s7 = int_to_ptr.vmem [resolvable:$false] %s3868_s7 }
 0xe5b   : > { %p3866_p11 = pnand %p3865_p8, %p5576_p12  ;;  %s3870_s8 = scalar_lea.vmem %s3869_s7, 32 }
 0xe5c   : > { %p3871_p1 = scmp.lt.s32.totalorder %s2808_s23, %s3869_s7  ;;  %p3872_p2 = scmp.lt.s32.totalorder %s3870_s8, %s3864_s3 }
 0xe5d   : > { %p3867_p13 = pneg %p3866_p11 }
 0xe5e   : > { %p3873_p3 = por %p3872_p2, %p3871_p1 }
 0xe60   : > { %p3874_p4 = pnand %p3873_p3, %p3867_p13 }
 0xe62   : > { %3877 = shalt.err (!%p3874_p4)
}
 0xe63   : > { %s3878_s21 = scalar_lea.hbm %s4744_s27, 16  ;;  %s3882_s6 = scalar_lea.hbm %s5507_s16, 32 }
 0xe64   : > { %p3879_p9 = scmp.ne.s32.totalorder %s4744_s27, %s3878_s21  ;;  %p3883_p10 = scmp.lt.u32.totalorder %s4744_s27, %s5507_s16 }
 0xe65   : > { %p3884_p0 = scmp.lt.u32.totalorder %s3882_s6, %s3878_s21  ;;  %p3886_p8 = scmp.lt.u32.totalorder %s3878_s21, %s4744_s27 }
 0xe66   : > { %p3880_p5 = pnand %p3879_p9, %p5576_p12 }
 0xe67   : > { %p3885_p7 = por %p3884_p0, %p3883_p10 }
 0xe68   : > { %p3881_p6 = pneg %p3880_p5 }
 0xe69   : > { %p3887_p11 = por %p3886_p8, %p3885_p7 }
 0xe6b   : > { %p3888_p13 = pnand %p3887_p11, %p3881_p6 }
 0xe6d   : > { %3891 = shalt.err (!%p3888_p13)
}
 0xe6e   : > { %3675 = dma.vmem_to_hbm [thread:$0]  (%p5576_p12), %s2808_s23, 16, %s4744_s27, %s2766_s29   ;;  %vm2756_vm15 = vcmp.eq.s32.totalorder %v4630_v28, 2  ;;  %vm2755_vm0 = vcmp.eq.s32.totalorder %v4630_v28, 1  ;;  %vm2754_vm1 = vcmp.eq.s32.totalorder %v4630_v28, 0  ;;  %v2254_v0 = vsel %vm2253_vm8, 1, %v3942_v2  ;;  %v3796_v26 = vld [vmem:[%s4369_s24] sm:$0xff] }
 0xe6f   : > { %s772_s8 = sld [smem:[#allocation2 + %s4075_s2]]  ;;  %s737_s28 = scalar_lea.vmem %s5511_s20, %s4173_s30  ;;  %v4801_v47 = vrot.slane %v4658_v19, %v4322_v59  ;;  %v4807_v37 = vadd.s32 8, %v4319_v58  ;;  %v2450_v50 = vrot.slane %v2254_v0, %v4322_v59  ;;  %v4811_v36 = vadd.s32 16, %v4319_v58  ;;  %v3797_v17 = vld [vmem:[%s4369_s24 + $0x8] sm:$0xff] }
 0xe70   : > { %s724_s27 = scalar_lea.vmem %s5508_s17, %s4173_s30  ;;  %v4845_v57 = vadd.s32 48, %v4319_v58  ;;  %v4858_v56 = vadd.s32 56, %v4319_v58  ;;  %v4877_v14 = vadd.s32 64, %v4319_v58  ;;  %v5593_v51 = vmov 0  ;;  %s5623_s23 = sld [smem:[#allocation37_spill]]  ;;  %v5721_v22 = vld [vmem:[#allocation24_spill] sm:$0xff] }
 0xe71   : > { %vm2379_vm4 = vcmp.eq.s32.totalorder %v4319_v58, %v4801_v47  ;;  %vm2380_vm6 = vcmp.eq.s32.totalorder %v4807_v37, %v4801_v47  ;;  %vm4840_vm9 = vcmp.eq.s32.totalorder %v2450_v50, 1  ;;  %vm2381_vm10 = vcmp.eq.s32.totalorder %v4811_v36, %v4801_v47  ;;  %s5703_s21 = sld [smem:[#allocation36_spill]] }
 0xe72   : > { %v4899_v53 = vadd.s32 72, %v4319_v58  ;;  %v5597_v27 = vmov 0  ;;  %v4921_v25 = vadd.s32 80, %v4319_v58  ;;  %v5599_v31 = vmov 0 }
 0xe73   : > { %v5601_v33 = vmov 0  ;;  %v5604_v52 = vmov 0  ;;  %v5606_v21 = vmov 0  ;;  %v5037_v0 = vadd.s32 120, %v4319_v58 }
 0xe74   : > { %v5627_v49 = vmov 0  ;;  %v5630_v48 = vmov 0  ;;  %v5632_v46 = vmov 0  ;;  %v5642_v8 = vmov 0 }
 0xe75   : > { %v4767_v30 = vstv %s772_s8  ;;  %v5659_v24 = vmov 0 }
 0xe76   : > { %vm2748_vm12 = vcmp.eq.s32.totalorder %v4630_v28, %v4767_v30  ;;  %s5034_s29 = scalar_lea.vmem %s5623_s23, %s4191_s26 }
 0xe77   : > { %s5367_s0 = scalar_lea.vmem %s5703_s21, %s4191_s26 }
 0xed5   : > { %v2370_v63 = vpop.xlane.xlu1 %2369 }
 0xed6   : > { %vm2371_vm13 = vcmp.gt.f32.partialorder %v2370_v63, 0.5  ;;  %v4965_v63 = vadd.s32 96, %v4319_v58 }
 0xed7   : > { %v4776_v18 = vsel %vm2371_vm13, 1, %v3942_v2  ;;  %vm2750_vm14 = vmand %vm2371_vm13, %vm2748_vm12 }
 0xed8   : > { %v2751_v29 = vsel %vm2750_vm14, 0.0, %v4627_v23  ;;  %v2753_v32 = vadd.s32 %v4776_v18, %v4767_v30  ;;  %v2373_v23 = vsel %vm2371_vm13, %v4767_v30, %v4705_v34 }
 0xed9   : > { %2752 = vst [vmem:[%s737_s28] sm:$0x1] %v2751_v29  ;;  %vm2374_vm2 = vcmp.eq.s32.totalorder %v4630_v28, %v2373_v23  ;;  %v4804_v62 = vrot.slane %v2373_v23, %v4322_v59  ;;  %v4821_v28 = vadd.s32 32, %v4319_v58  ;;  %v5609_v29 = vmov 0 }
 0xeda   : > { %v2757_v35 = vsel %vm2756_vm15, %v2753_v32, 0  ;;  %v2500_v44 = vsel %vm2374_vm2, 1, %v3942_v2  ;;  %v4818_v2 = vadd.s32 24, %v4319_v58  ;;  %vm2386_vm2 = vcmp.eq.s32.totalorder %v4858_v56, %v4801_v47 }
 0xedb   : > { %v2758_v38 = vsel %vm2755_vm0, %v4705_v34, %v2757_v35  ;;  %v2504_v20 = vrot.slane %v2500_v44, %v4322_v59  ;;  %vm2399_vm5 = vcmp.eq.s32.totalorder %v4319_v58, %v4804_v62  ;;  %vm2400_vm7 = vcmp.eq.s32.totalorder %v4807_v37, %v4804_v62 }
 0xedc   : > { %v2759_v41 = vsel %vm2754_vm1, %v4658_v19, %v2758_v38  ;;  %v4828_v19 = vadd.s32 40, %v4319_v58  ;;  %vm2401_vm11 = vcmp.eq.s32.totalorder %v4811_v36, %v4804_v62  ;;  %vm2382_vm13 = vcmp.eq.s32.totalorder %v4818_v2, %v4801_v47  ;;  %vm4866_vm15 = vmand %vm2399_vm5, %vm4840_vm9 }
 0xedd   : > { %2760 = vst [vmem:[%s724_s27] sm:$0x1] %v2759_v41  ;;  %vm4813_vm3 = vcmp.eq.s32.totalorder %v2504_v20, 1  ;;  %vm2402_vm14 = vcmp.eq.s32.totalorder %v4818_v2, %v4804_v62  ;;  %vm2383_vm1 = vcmp.eq.s32.totalorder %v4821_v28, %v4801_v47  ;;  %v4943_v34 = vadd.s32 88, %v4319_v58 }
 0xede   : > { %vm4836_vm8 = vmand %vm2379_vm4, %vm4813_vm3  ;;  %v5611_v32 = vmov 0  ;;  %v4987_v35 = vadd.s32 104, %v4319_v58  ;;  %v5614_v38 = vmov 0  ;;  %v5616_v23 = vmov 0 }
 0xedf   : > { %vm4853_vm12 = vmand %vm2380_vm6, %vm4813_vm3  ;;  %vm2384_vm6 = vcmp.eq.s32.totalorder %v4828_v19, %v4801_v47  ;;  %v5009_v41 = vadd.s32 112, %v4319_v58  ;;  %v5619_v44 = vmov 0  ;;  %v5621_v20 = vmov 0 }
 0xee0   : > { %vm4872_vm0 = vmand %vm2381_vm10, %vm4813_vm3  ;;  %vm2385_vm10 = vcmp.eq.s32.totalorder %v4845_v57, %v4801_v47 }
 0xee1   : > { %vm4888_vm4 = vmand %vm2400_vm7, %vm4840_vm9 }
 0xee2   : > { %vm4894_vm5 = vmand %vm2382_vm13, %vm4813_vm3 }
 0xee3   : > { %v5594_v51 = vsel %vm4894_vm5, 4294967295, %v5593_v51  ;;  %vm4910_vm7 = vmand %vm2401_vm11, %vm4840_vm9 }
 0xee4   : > { %vm4916_vm13 = vmand %vm2383_vm1, %vm4813_vm3 }
 0xee5   : > { %v5598_v27 = vsel %vm4916_vm13, 4294967295, %v5597_v27  ;;  %vm4932_vm11 = vmand %vm2402_vm14, %vm4840_vm9  ;;  %vm5603_vm14 = vcmp.eq.s32.totalorder %v4821_v28, %v4804_v62  ;;  %vm2387_vm13 = vcmp.eq.s32.totalorder %v4877_v14, %v4801_v47 }
 0xee6   : > { %v5600_v31 = vsel %vm4932_vm11, 4294967295, %v5599_v31  ;;  %vm4938_vm1 = vmand %vm2384_vm6, %vm4813_vm3 }
 0xee7   : > { %v5602_v33 = vsel %vm4938_vm1, 4294967295, %v5601_v33  ;;  %vm4954_vm11 = vmand %vm5603_vm14, %vm4840_vm9  ;;  %vm5608_vm14 = vcmp.eq.s32.totalorder %v4828_v19, %v4804_v62  ;;  %vm2388_vm1 = vcmp.eq.s32.totalorder %v4899_v53, %v4801_v47 }
 0xee8   : > { %v5605_v52 = vsel %vm4954_vm11, 4294967295, %v5604_v52  ;;  %vm4960_vm6 = vmand %vm2385_vm10, %vm4813_vm3 }
 0xee9   : > { %v5607_v21 = vsel %vm4960_vm6, 4294967295, %v5606_v21  ;;  %vm4976_vm11 = vmand %vm5608_vm14, %vm4840_vm9  ;;  %vm5613_vm14 = vcmp.eq.s32.totalorder %v4845_v57, %v4804_v62  ;;  %vm2389_vm6 = vcmp.eq.s32.totalorder %v4921_v25, %v4801_v47 }
 0xeea   : > { %v5610_v29 = vsel %vm4976_vm11, 4294967295, %v5609_v29  ;;  %vm4982_vm10 = vmand %vm2386_vm2, %vm4813_vm3 }
 0xeeb   : > { %v5612_v32 = vsel %vm4982_vm10, 4294967295, %v5611_v32  ;;  %vm4998_vm11 = vmand %vm5613_vm14, %vm4840_vm9  ;;  %vm5618_vm14 = vcmp.eq.s32.totalorder %v4858_v56, %v4804_v62 }
 0xeec   : > { %v5615_v38 = vsel %vm4998_vm11, 4294967295, %v5614_v38  ;;  %vm5004_vm2 = vmand %vm2387_vm13, %vm4813_vm3 }
 0xeed   : > { %v5617_v23 = vsel %vm5004_vm2, 4294967295, %v5616_v23  ;;  %vm5020_vm11 = vmand %vm5618_vm14, %vm4840_vm9  ;;  %vm2390_vm14 = vcmp.eq.s32.totalorder %v4943_v34, %v4801_v47 }
 0xeee   : > { %v5620_v44 = vsel %vm5020_vm11, 4294967295, %v5619_v44  ;;  %vm5026_vm13 = vmand %vm2388_vm1, %vm4813_vm3  ;;  %vm5624_vm1 = vcmp.eq.s32.totalorder %v4877_v14, %v4804_v62  ;;  %vm2391_vm11 = vcmp.eq.s32.totalorder %v4965_v63, %v4801_v47 }
 0xeef   : > { %v5622_v20 = vsel %vm5026_vm13, 4294967295, %v5621_v20  ;;  %vm5048_vm13 = vmand %vm5624_vm1, %vm4840_vm9  ;;  %vm5629_vm1 = vcmp.eq.s32.totalorder %v4899_v53, %v4804_v62 }
 0xef0   : > { %vm5054_vm2 = vmand %vm2389_vm6, %vm4813_vm3 }
 0xef1   : > { %v5628_v49 = vsel %vm5054_vm2, 4294967295, %v5627_v49  ;;  %vm5067_vm5 = vmand %vm5629_vm1, %vm4840_vm9  ;;  %vm2392_vm2 = vcmp.eq.s32.totalorder %v4987_v35, %v4801_v47 }
 0xef2   : > { %v5631_v48 = vsel %vm5067_vm5, 4294967295, %v5630_v48  ;;  %vm5073_vm6 = vmand %vm2390_vm14, %vm4813_vm3  ;;  %vm5634_vm14 = vcmp.eq.s32.totalorder %v4921_v25, %v4804_v62 }
 0xef3   : > { %v5633_v46 = vsel %vm5073_vm6, 4294967295, %v5632_v46  ;;  %vm2522_vm10 = vmor %vm4866_vm15, %vm4836_vm8  ;;  %vm2393_vm15 = vcmp.eq.s32.totalorder %v5009_v41, %v4801_v47 }
 0xef4   : > { %vm5090_vm5 = vmand %vm5634_vm14, %vm4840_vm9  ;;  %v2538_v43 = vsel %vm2522_vm10, 1.0, %v3796_v26  ;;  %vm2394_vm10 = vcmp.eq.s32.totalorder %v5037_v0, %v4801_v47 }
 0xef5   : > { %vm5096_vm6 = vmand %vm2391_vm11, %vm4813_vm3  ;;  %vm5639_vm11 = vcmp.eq.s32.totalorder %v4943_v34, %v4804_v62  ;;  %2554 = vst [vmem:[%s5034_s29] sm:$0xff] %v2538_v43  ;;  %v5647_v43 = vmov 0 }
 0xef6   : > { %vm2523_vm8 = vmor %vm4888_vm4, %vm4853_vm12 }
 0xef7   : > { %vm5114_vm1 = vmand %vm5639_vm11, %vm4840_vm9  ;;  %v2539_v26 = vsel %vm2523_vm8, 1.0, %v3797_v17  ;;  %vm5650_vm8 = vnez %v5600_v31 }
 0xef8   : > { %vm5120_vm12 = vmand %vm2392_vm2, %vm4813_vm3  ;;  %vm5644_vm2 = vcmp.eq.s32.totalorder %v4965_v63, %v4804_v62  ;;  %2555 = vst [vmem:[%s5034_s29 + $0x8] sm:$0xff] %v2539_v26  ;;  %v5716_v26 = vld [vmem:[#allocation20_spill] sm:$0xff] }
 0xef9   : > { %v5643_v8 = vsel %vm5120_vm12, 4294967295, %v5642_v8  ;;  %vm2524_vm4 = vmor %vm4910_vm7, %vm4872_vm0  ;;  %vm5649_vm7 = vnez %v5594_v51  ;;  %v5654_v51 = vmov 0 }
 0xefa   : > { %vm5139_vm14 = vmand %vm5644_vm2, %vm4840_vm9  ;;  %v2540_v47 = vsel %vm2524_vm4, 1.0, %v4395_v54  ;;  %vm5651_vm2 = vcmp.eq.s32.totalorder %v4987_v35, %v4804_v62  ;;  %vm5657_vm4 = vnez %v5605_v52 }
 0xefb   : > { %vm5145_vm0 = vmand %vm2393_vm15, %vm4813_vm3  ;;  %2556 = vst [vmem:[%s5034_s29 + $0x10] sm:$0xff] %v2540_v47 }
 0xefc   : > { %v5648_v43 = vsel %vm5145_vm0, 4294967295, %v5647_v43  ;;  %vm2525_vm11 = vmor %vm5650_vm8, %vm5649_vm7  ;;  %vm5656_vm7 = vnez %v5598_v27 }
 0xefd   : > { %vm5160_vm12 = vmand %vm5651_vm2, %vm4840_vm9  ;;  %v2541_v54 = vsel %vm2525_vm11, 1.0, %v4398_v55  ;;  %vm5658_vm2 = vcmp.eq.s32.totalorder %v5009_v41, %v4804_v62  ;;  %vm5663_vm11 = vcmp.eq.s32.totalorder %v5037_v0, %v4804_v62 }
 0xefe   : > { %vm5166_vm15 = vmand %vm2394_vm10, %vm4813_vm3  ;;  %vm5661_vm3 = vnez %v5602_v33  ;;  %vm5662_vm10 = vnez %v5610_v29  ;;  %2557 = vst [vmem:[%s5034_s29 + $0x18] sm:$0xff] %v2541_v54  ;;  %v5722_v54 = vld [vmem:[#allocation25_spill] sm:$0xff] }
 0xeff   : > { %v5655_v51 = vsel %vm5166_vm15, 4294967295, %v5654_v51  ;;  %vm2526_vm8 = vmor %vm5657_vm4, %vm5656_vm7  ;;  %vm5666_vm4 = vnez %v5607_v21  ;;  %v3801_v21 = vld [vmem:[%s4209_s19 + $0x18] sm:$0xff] }
 0xf00   : > { %vm5181_vm0 = vmand %vm5658_vm2, %vm4840_vm9  ;;  %v2542_v27 = vsel %vm2526_vm8, 1.0, %v4401_v60  ;;  %vm5667_vm2 = vnez %v5615_v38  ;;  %vm5668_vm8 = vnez %v5612_v32  ;;  %v3802_v32 = vld [vmem:[%s4209_s19 + $0x20] sm:$0xff]  ;;  %v3803_v38 = vld [vmem:[%s4209_s19 + $0x28] sm:$0xff] }
 0xf01   : > { %v5660_v24 = vsel %vm5181_vm0, 4294967295, %v5659_v24  ;;  %vm2527_vm15 = vmor %vm5662_vm10, %vm5661_vm3  ;;  %2558 = vst [vmem:[%s5034_s29 + $0x20] sm:$0xff] %v2542_v27  ;;  %vm5669_vm3 = vnez %v5620_v44  ;;  %v3804_v44 = vld [vmem:[%s4209_s19 + $0x30] sm:$0xff] }
 0xf02   : > { %vm5196_vm7 = vmand %vm5663_vm11, %vm4840_vm9  ;;  %v2543_v31 = vsel %vm2527_vm15, 1.0, %v4404_v61  ;;  %vm5670_vm9 = vnez %v5617_v23  ;;  %vm5671_vm15 = vnez %v5622_v20  ;;  %v3805_v20 = vld [vmem:[%s4209_s19 + $0x38] sm:$0xff] }
 0xf03   : > { %vm2528_vm0 = vmor %vm5667_vm2, %vm5666_vm4  ;;  %2559 = vst [vmem:[%s5034_s29 + $0x28] sm:$0xff] %v2543_v31  ;;  %vm5672_vm4 = vnez %v5631_v48 }
 0xf04   : > { %vm2529_vm10 = vmor %vm5669_vm3, %vm5668_vm8  ;;  %v2544_v60 = vsel %vm2528_vm0, 1.0, %v4417_v3  ;;  %vm5673_vm0 = vnez %v5628_v49 }
 0xf05   : > { %vm2530_vm11 = vmor %vm5048_vm13, %vm5670_vm9  ;;  %v2545_v62 = vsel %vm2529_vm10, 1.0, %v4420_v4  ;;  %2560 = vst [vmem:[%s5034_s29 + $0x30] sm:$0xff] %v2544_v60  ;;  %vm5674_vm13 = vnez %v5633_v46 }
 0xf06   : > { %vm2531_vm2 = vmor %vm5672_vm4, %vm5671_vm15  ;;  %v2546_v61 = vsel %vm2530_vm11, 1.0, %v4423_v5  ;;  %2561 = vst [vmem:[%s5034_s29 + $0x38] sm:$0xff] %v2545_v62  ;;  %vm5677_vm11 = vnez %v5660_v24  ;;  %v2662_v5 = vrot.slane %v4776_v18, %v4322_v59  ;;  %vm2643_vm4 = vcmp.eq.s32.totalorder %v4807_v37, %v4767_v30 }
 0xf07   : > { %vm2532_vm8 = vmor %vm5090_vm5, %vm5673_vm0  ;;  %v2547_v3 = vsel %vm2531_vm2, 1.0, %v4426_v6  ;;  %2562 = vst [vmem:[%s5034_s29 + $0x40] sm:$0xff] %v2546_v61  ;;  %vm5675_vm5 = vnez %v5643_v8  ;;  %vm2644_vm2 = vcmp.eq.s32.totalorder %v4811_v36, %v4767_v30  ;;  %v5695_v18 = vmov 0 }
 0xf08   : > { %vm2533_vm3 = vmor %vm5114_vm1, %vm5674_vm13  ;;  %v2548_v48 = vsel %vm2532_vm8, 1.0, %v4439_v9  ;;  %2563 = vst [vmem:[%s5034_s29 + $0x48] sm:$0xff] %v2547_v3  ;;  %vm5676_vm1 = vnez %v5648_v43  ;;  %vm5273_vm0 = vcmp.eq.s32.totalorder %v2662_v5, 1  ;;  %vm2646_vm8 = vcmp.eq.s32.totalorder %v4821_v28, %v4767_v30 }
 0xf09   : > { %vm2534_vm10 = vmor %vm5139_vm14, %vm5096_vm6  ;;  %v2549_v45 = vsel %vm2533_vm3, 1.0, %v4442_v10  ;;  %2564 = vst [vmem:[%s5034_s29 + $0x50] sm:$0xff] %v2548_v48  ;;  %vm5678_vm6 = vnez %v5655_v51  ;;  %vm2647_vm13 = vcmp.eq.s32.totalorder %v4828_v19, %v4767_v30  ;;  %vm2648_vm3 = vcmp.eq.s32.totalorder %v4845_v57, %v4767_v30 }
 0xf0a   : > { %vm2535_vm9 = vmor %vm5160_vm12, %vm5675_vm5  ;;  %v2550_v42 = vsel %vm2534_vm10, 1.0, %v4445_v11  ;;  %2565 = vst [vmem:[%s5034_s29 + $0x58] sm:$0xff] %v2549_v45  ;;  %vm2642_vm12 = vcmp.eq.s32.totalorder %v4319_v58, %v4767_v30  ;;  %vm2649_vm10 = vcmp.eq.s32.totalorder %v4858_v56, %v4767_v30  ;;  %v5699_v36 = vmov 0 }
 0xf0b   : > { %vm2536_vm15 = vmor %vm5677_vm11, %vm5676_vm1  ;;  %v2551_v46 = vsel %vm2535_vm9, 1.0, %v4448_v12  ;;  %2566 = vst [vmem:[%s5034_s29 + $0x60] sm:$0xff] %v2550_v42 }
 0xf0c   : > { %vm2537_vm14 = vmor %vm5196_vm7, %vm5678_vm6  ;;  %v2552_v49 = vsel %vm2536_vm15, 1.0, %v4461_v15  ;;  %2567 = vst [vmem:[%s5034_s29 + $0x68] sm:$0xff] %v2551_v46  ;;  %vm2645_vm7 = vcmp.eq.s32.totalorder %v4818_v2, %v4767_v30  ;;  %vm2650_vm15 = vcmp.eq.s32.totalorder %v4877_v14, %v4767_v30  ;;  %v5701_v2 = vmov 0 }
 0xf0d   : > { %v2553_v4 = vsel %vm2537_vm14, 1.0, %v4464_v16  ;;  %2568 = vst [vmem:[%s5034_s29 + $0x70] sm:$0xff] %v2552_v49  ;;  %vm5287_vm5 = vmand %vm5273_vm0, %vm2642_vm12  ;;  %vm2651_vm12 = vcmp.eq.s32.totalorder %v4899_v53, %v4767_v30 }
 0xf0e   : > { %2569 = vst [vmem:[%s5034_s29 + $0x78] sm:$0xff] %v2553_v4  ;;  %vm5293_vm9 = vmand %vm5273_vm0, %vm2643_vm4 }
 0xf0f   : > { %vm5299_vm1 = vmand %vm5273_vm0, %vm2644_vm2  ;;  %vm2652_vm2 = vcmp.eq.s32.totalorder %v4921_v25, %v4767_v30  ;;  %v3799_v25 = vld [vmem:[%s4209_s19 + $0x8] sm:$0xff] }
 0xf10   : > { %vm5305_vm11 = vmand %vm5273_vm0, %vm2645_vm7 }
 0xf11   : > { %vm5313_vm6 = vmand %vm5273_vm0, %vm2646_vm8  ;;  %vm2653_vm8 = vcmp.eq.s32.totalorder %v4943_v34, %v4767_v30  ;;  %v3800_v34 = vld [vmem:[%s4209_s19 + $0x10] sm:$0xff] }
 0xf12   : > { %vm5319_vm14 = vmand %vm5273_vm0, %vm2647_vm13 }
 0xf13   : > { %vm5327_vm4 = vmand %vm5273_vm0, %vm2648_vm3  ;;  %vm2654_vm3 = vcmp.eq.s32.totalorder %v4965_v63, %v4767_v30 }
 0xf14   : > { %vm5335_vm7 = vmand %vm5273_vm0, %vm2649_vm10 }
 0xf15   : > { %v5696_v18 = vsel %vm5335_vm7, 4294967295, %v5695_v18  ;;  %vm5343_vm13 = vmand %vm5273_vm0, %vm2650_vm15  ;;  %vm2655_vm7 = vcmp.eq.s32.totalorder %v4987_v35, %v4767_v30 }
 0xf16   : > { %vm5351_vm10 = vmand %vm5273_vm0, %vm2651_vm12  ;;  %vm2656_vm12 = vcmp.eq.s32.totalorder %v5009_v41, %v4767_v30 }
 0xf17   : > { %v5700_v36 = vsel %vm5351_vm10, 4294967295, %v5699_v36  ;;  %vm5359_vm15 = vmand %vm5273_vm0, %vm2652_vm2  ;;  %vm2657_vm2 = vcmp.eq.s32.totalorder %v5037_v0, %v4767_v30  ;;  %v5718_v0 = vld [vmem:[#allocation21_spill] sm:$0xff] }
 0xf18   : > { %v5702_v2 = vsel %vm5359_vm15, 4294967295, %v5701_v2  ;;  %vm5373_vm10 = vmand %vm5273_vm0, %vm2653_vm8 }
 0xf19   : > { %v2638_v28 = vpop.f32.mrb[82].mxu0  ;;  %vm5382_vm15 = vmand %vm5273_vm0, %vm2654_vm3 }
 0xf1a   : > { %v2715_v7 = vrot.slane %v2638_v28, %v4322_v59  ;;  %v3581_v57 = vpop.f32.mrb[83].mxu0  ;;  %vm5388_vm8 = vmand %vm5273_vm0, %vm2655_vm7  ;;  %v3798_v59 = vld [vmem:[%s4209_s19] sm:$0xff] }
 0xf1c   : > { %v2716_v53 = vsel %vm5287_vm5, %v2715_v7, %v3798_v59  ;;  %v2717_v33 = vsel %vm5293_vm9, %v2715_v7, %v3799_v25  ;;  %v2718_v52 = vsel %vm5299_vm1, %v2715_v7, %v3800_v34  ;;  %v2719_v63 = vsel %vm5305_vm11, %v2715_v7, %v3801_v21  ;;  %vm5409_vm5 = vmand %vm5273_vm0, %vm2656_vm12 }
 0xf1d   : > { %v2720_v35 = vsel %vm5313_vm6, %v2715_v7, %v3802_v32  ;;  %v2721_v23 = vsel %vm5319_vm14, %v2715_v7, %v3803_v38  ;;  %v2722_v41 = vsel %vm5327_vm4, %v2715_v7, %v3804_v44  ;;  %vm5712_vm9 = vnez %v5696_v18  ;;  %2732 = vst [vmem:[%s5367_s0] sm:$0xff] %v2716_v53  ;;  %2733 = vst [vmem:[%s5367_s0 + $0x8] sm:$0xff] %v2717_v33 }
 0xf1e   : > { %v2723_v50 = vsel %vm5712_vm9, %v2715_v7, %v3805_v20  ;;  %2734 = vst [vmem:[%s5367_s0 + $0x10] sm:$0xff] %v2718_v52  ;;  %2735 = vst [vmem:[%s5367_s0 + $0x18] sm:$0xff] %v2719_v63  ;;  %v2724_v8 = vsel %vm5343_vm13, %v2715_v7, %v4254_v39  ;;  %vm5715_vm11 = vnez %v5700_v36  ;;  %vm5717_vm6 = vnez %v5702_v2  ;;  %v5719_v39 = vld [vmem:[#allocation22_spill] sm:$0xff] }
 0xf1f   : > { %vm5434_vm1 = vmand %vm5273_vm0, %vm2657_vm2  ;;  %v2725_v17 = vsel %vm5715_vm11, %v2715_v7, %v4257_v40  ;;  %v2726_v30 = vsel %vm5717_vm6, %v2715_v7, %v5716_v26  ;;  %v2727_v13 = vsel %vm5373_vm10, %v2715_v7, %v5718_v0  ;;  %2736 = vst [vmem:[%s5367_s0 + $0x20] sm:$0xff] %v2720_v35  ;;  %v2728_v43 = vsel %vm5382_vm15, %v2715_v7, %v5719_v39  ;;  %v5720_v40 = vld [vmem:[#allocation23_spill] sm:$0xff] }
 0xf20   : > { %2737 = vst [vmem:[%s5367_s0 + $0x28] sm:$0xff] %v2721_v23  ;;  %2738 = vst [vmem:[%s5367_s0 + $0x30] sm:$0xff] %v2722_v41  ;;  %v2729_v47 = vsel %vm5388_vm8, %v2715_v7, %v5720_v40  ;;  %v2730_v51 = vsel %vm5409_vm5, %v2715_v7, %v5721_v22  ;;  %v2731_v24 = vsel %vm5434_vm1, %v2715_v7, %v5722_v54 }
 0xf21   : > { %2739 = vst [vmem:[%s5367_s0 + $0x38] sm:$0xff] %v2723_v50  ;;  %2740 = vst [vmem:[%s5367_s0 + $0x40] sm:$0xff] %v2724_v8 }
 0xf22   : > { %2741 = vst [vmem:[%s5367_s0 + $0x48] sm:$0xff] %v2725_v17  ;;  %2742 = vst [vmem:[%s5367_s0 + $0x50] sm:$0xff] %v2726_v30 }
 0xf23   : > { %2743 = vst [vmem:[%s5367_s0 + $0x58] sm:$0xff] %v2727_v13  ;;  %2744 = vst [vmem:[%s5367_s0 + $0x60] sm:$0xff] %v2728_v43 }
 0xf24   : > { %2745 = vst [vmem:[%s5367_s0 + $0x68] sm:$0xff] %v2729_v47  ;;  %2746 = vst [vmem:[%s5367_s0 + $0x70] sm:$0xff] %v2730_v51 }
 0xf25   : > { %2747 = vst [vmem:[%s5367_s0 + $0x78] sm:$0xff] %v2731_v24 }
 0xf26 PF: > { %s5723_s19 = sld [smem:[#allocation16_spill]]  ;;  %s5724_s26 = sld [smem:[#allocation14_spill]] }
 0xf27   : > { %s5725_s18 = sld [smem:[#allocation19_spill]] }
 0xf2c   : > { %p3696_p12 = scmp.ge.s32.totalorder %s5723_s19, 2  ;;  %s2831_s6 = sand.u32 1, %s5724_s26  }
 0xf2d   : > { %p5726_p1 = scmp.ne.s32.totalorder %s5725_s18, 0  ;;  %s2832_s25 = scalar_lea.sflag [#allocation3], %s2831_s6 }
 0xf2f   : > { %p3686_p2 = pnand %p3696_p12, %p5726_p1 }
 0xf31   : > { %3917 = dma.done.wait (!%p3686_p2), %s2832_s25, 16  }
 0xf32   : > { %3919 = vsyncadd (!%p3686_p2), %s2832_s25, 4294967280  ;;  %s2840_s7 = scalar_lea.sflag [#allocation9], %s2831_s6 }
 0xf33   : > { %3921 = dma.done.wait (!%p3686_p2), %s2840_s7, 16  }
 0xf34   : > { %3923 = vsyncadd (!%p3686_p2), %s2840_s7, 4294967280  ;;  %s5727_s24 = sld [smem:[#allocation17_spill]]  ;;  %s5728_s8 = sld [smem:[#allocation15_spill]] }
 0xf35   : > { %s5729_s23 = sld [smem:[#allocation18_spill]]  ;;  %s5730_s1 = smov %s3930_s22 }
 0xf3a   : > { %p36_p3 = scmp.ge.s32.totalorder %s5727_s24, 4   ;;  %s5731_s22 = smov %s5728_s8 }
 0xf3c   :  { %38 = sbr.rel (!%p36_p3) target bundleno = 20 (0x14), region = 195 }
 0xf43   :  { %2872 = vsyncpa [#allocation3], 1 }
 0xf44   :  { %2874 = vsyncpa [#allocation3 + $0x1], 1 }
 0xf45   :  { %2875 = vsyncpa [#allocation9], 1 }
 0xf46   :  { %2877 = vsyncpa [#allocation9 + $0x1], 1 }
 0xf47   :  { %2878 = vsyncpa [#allocation4], 1 }
 0xf48   :  { %2880 = vsyncpa [#allocation4 + $0x1], 1 }
 0xf49   :  { %2881 = vsyncpa [#allocation6], 1 }

</bundles_post_ra>
